<compile_context>
chip_gen: v6e
topology: v6e:2x2x1
jax: 0.10.0
libtpu: 0.0.40
codegen_flags: <defaults>
</compile_context>

<pallas_src>
import jax
import jax.numpy as jnp
from jax.experimental import pallas as pl
from jax.experimental.pallas import tpu as pltpu

EPS = 1e-5
LANE = 128
SUBLANE = 8


# ------------------------------ fused Pallas kernel ----------------------------- #

def gcnnet_fused_kernel(x_ref, adj_ref, pool_ref, feat_vec_ref,
                        w_feat_ref, w_conv_ref, w_head_ref, vec_ref, o_ref):
    f32, bf16 = jnp.float32, jnp.bfloat16
    N = x_ref.shape[0]
    G = pool_ref.shape[0]
    H = w_feat_ref.shape[1]
    C = o_ref.shape[1]

    def bn_fold(h, gamma, beta, inv_n):
        # BatchNorm1d (training-mode batch stats, biased var) folded to one
        # inline scale+shift.  var = E[x^2] - E[x]^2: the two cross-sublane
        # reductions are independent (no serial mean -> center -> reduce).
        # Stats / scale / shift stay in f32; bf16 only at the MXU inputs.
        mean = jnp.sum(h, axis=0, keepdims=True) * inv_n
        msq = jnp.sum(h * h, axis=0, keepdims=True) * inv_n
        var = msq - mean * mean
        s = gamma * jax.lax.rsqrt(var + EPS)
        t = beta - mean * s
        return h * s + t

    adj = adj_ref[...]        # A_hat (bf16), loaded once, reused by all 3 conv layers
    vec = vec_ref[...]        # packed gamma/beta/bias rows (f32)
    fv = feat_vec_ref[...]    # bn_feat gamma/beta (f32, width Fp)
    inv_n = 1.0 / N
    inv_g = 1.0 / G

    # bn_feat -> conv_feat (gfn=True: plain x @ W, no propagation / bias) -> ReLU
    h = bn_fold(x_ref[...], fv[0:1], fv[1:2], inv_n)
    h = jnp.dot(h.astype(bf16), w_feat_ref[...], preferred_element_type=f32)
    h = jnp.maximum(h, 0.0)

    # 3 x (bn -> GCNConv -> ReLU):  relu(A_hat @ (bn(h) @ W) + b)
    for i in range(3):
        g = vec[3 * i:3 * i + 1, :H]
        b = vec[3 * i + 1:3 * i + 2, :H]
        bias = vec[3 * i + 2:3 * i + 3, :H]
        z = bn_fold(h, g, b, inv_n)
        z = jnp.dot(z.astype(bf16), w_conv_ref[i], preferred_element_type=f32)
        agg = jnp.dot(adj, z.astype(bf16), preferred_element_type=f32)
        h = jnp.maximum(agg + bias, 0.0)

    # global_add_pool as one-hot matmul: pooled[g] = sum_{n in graph g} h[n]
    p = jnp.dot(pool_ref[...], h.astype(bf16), preferred_element_type=f32)

    # fc block (num_fc_layers=2 -> one bn + lin + relu pair)
    p = bn_fold(p, vec[9:10, :H], vec[10:11, :H], inv_g)
    p = jnp.dot(p.astype(bf16), w_head_ref[:, :H], preferred_element_type=f32)
    p = jnp.maximum(p + vec[11:12, :H], 0.0)

    # bn_hidden -> lin_class
    p = bn_fold(p, vec[12:13, :H], vec[13:14, :H], inv_g)
    o_ref[...] = (jnp.dot(p.astype(bf16), w_head_ref[:, H:H + C],
                          preferred_element_type=f32) + vec[14:15, :C])


# ------------------------------ pallas_call wrapper ------------------------------ #

def _ceil_to(x, m):
    return ((x + m - 1) // m) * m


def _pad_to(a, shape):
    return jnp.pad(a, [(0, t - s) for s, t in zip(a.shape, shape)])


def _row(v, width):
    return _pad_to(jnp.asarray(v, jnp.float32).reshape(1, -1), (1, width))


def gcnnet_forward(params, x, adj, pool_mat):
    N, F = x.shape
    G = pool_mat.shape[0]
    H = params["conv_feat_w"].shape[1]
    C = params["lin_class_w"].shape[1]
    Fp = _ceil_to(F, SUBLANE)     # contraction dim: one sublane is enough
    Hp = _ceil_to(H, LANE)        # output lane dims stay 128-dense
    Cp = _ceil_to(C, LANE)
    Vp = max(Hp, Cp)
    bf16 = jnp.bfloat16

    # Node features / graph structure (padded gamma/beta/bias/weight entries are
    # zero, so padded columns stay exactly zero through every layer).
    xp = _pad_to(x.astype(jnp.float32), (N, Fp))
    adj_b = adj.astype(bf16)
    pool_b = pool_mat.astype(bf16)

    # bn_feat gamma/beta (f32, width Fp)
    feat_vec = jnp.concatenate([_row(params["bn_feat_g"], Fp),
                                _row(params["bn_feat_b"], Fp)], axis=0)

    # Weights as bf16 MXU operands.
    w_feat = _pad_to(params["conv_feat_w"], (Fp, Hp)).astype(bf16)
    w_conv = jnp.stack([_pad_to(params[f"conv{i}_w"], (Hp, Hp))
                        for i in range(3)]).astype(bf16)
    w_head = jnp.concatenate([_pad_to(params["lin0_w"], (Hp, Hp)),
                              _pad_to(params["lin_class_w"], (Hp, Cp))],
                             axis=1).astype(bf16)

    # 15 tiny gamma/beta/bias vectors packed into one (16, Vp) f32 array.
    rows = []
    for i in range(3):
        rows += [_row(params[f"bn_conv{i}_g"], Vp),
                 _row(params[f"bn_conv{i}_b"], Vp),
                 _row(params[f"conv{i}_b"], Vp)]
    rows += [_row(params["bn_fc0_g"], Vp), _row(params["bn_fc0_b"], Vp),
             _row(params["lin0_b"], Vp),
             _row(params["bn_hidden_g"], Vp), _row(params["bn_hidden_b"], Vp),
             _row(params["lin_class_b"], Vp)]
    n_rows = _ceil_to(len(rows), SUBLANE)
    vec = jnp.concatenate(
        rows + [jnp.zeros((n_rows - len(rows), Vp), jnp.float32)], axis=0)

    args = (xp, adj_b, pool_b, feat_vec, w_feat, w_conv, w_head, vec)

    in_bytes = sum(int(a.size) * a.dtype.itemsize for a in args)
    out_bytes = G * Cp * 4
    flops = (2 * N * Fp * Hp                               # conv_feat
             + 3 * (2 * N * Hp * Hp + 2 * N * N * Hp)      # 3x (Z@W, A_hat@Z)
             + 2 * G * N * Hp                              # pooling
             + 2 * G * Hp * Hp                             # lin0
             + 2 * G * Hp * Cp)                            # lin_class
    cost = pl.CostEstimate(flops=int(flops),
                           transcendentals=int(Fp + 5 * Hp),   # rsqrt lanes of 6 BN folds
                           bytes_accessed=int(in_bytes + out_bytes))

    vmem_spec = pl.BlockSpec(memory_space=pltpu.MemorySpace.VMEM)
    out = pl.pallas_call(
        gcnnet_fused_kernel,
        out_shape=jax.ShapeDtypeStruct((G, Cp), jnp.float32),
        in_specs=[vmem_spec] * len(args),
        out_specs=vmem_spec,
        cost_estimate=cost,
    )(*args)
    return out[:, :C]


# --------------------------------- graph helpers --------------------------------- #

def build_norm_adj(edge_index, num_nodes):
    """Dense A_hat with self loops + symmetric normalization (GCNConv.norm)."""
    row, col = edge_index[0], edge_index[1]          # row = source j, col = target i
    loop = jnp.arange(num_nodes, dtype=edge_index.dtype)
    row = jnp.concatenate([row, loop])
    col = jnp.concatenate([col, loop])
    ew = jnp.ones(row.shape[0], jnp.float32)
    deg = jnp.zeros((num_nodes,), jnp.float32).at[row].add(ew)
    dis = jnp.where(deg > 0, 1.0 / jnp.sqrt(deg), 0.0)
    norm = dis[row] * ew * dis[col]
    # out[i] = sum_{e: target=i} norm[e] * h[source[e]]  =>  A_hat[i, j] += norm
    return jnp.zeros((num_nodes, num_nodes), jnp.float32).at[col, row].add(norm)


def build_pool_matrix(batch, num_graphs):
    return (batch[None, :] == jnp.arange(num_graphs)[:, None]).astype(jnp.float32)


# ------------------------------- reference (jnp, f32) ---------------------------- #

def _bn_ref(x, g, b):
    m = jnp.mean(x, axis=0, keepdims=True)
    v = jnp.mean((x - m) ** 2, axis=0, keepdims=True)
    return (x - m) / jnp.sqrt(v + EPS) * g + b


def gcnnet_forward_ref(params, x, adj, pool_mat):
    x = _bn_ref(x, params["bn_feat_g"], params["bn_feat_b"])
    x = jnp.maximum(x @ params["conv_feat_w"], 0.0)
    for i in range(3):
        x = _bn_ref(x, params[f"bn_conv{i}_g"], params[f"bn_conv{i}_b"])
        x = jnp.maximum(adj @ (x @ params[f"conv{i}_w"]) + params[f"conv{i}_b"], 0.0)
    x = pool_mat @ x
    x = _bn_ref(x, params["bn_fc0_g"], params["bn_fc0_b"])
    x = jnp.maximum(x @ params["lin0_w"] + params["lin0_b"], 0.0)
    x = _bn_ref(x, params["bn_hidden_g"], params["bn_hidden_b"])
    return x @ params["lin_class_w"] + params["lin_class_b"]


# ------------------------------------- main -------------------------------------- #

def init_params(key, num_features, hidden, num_classes):
    def glorot(k, shape):
        lim = jnp.sqrt(6.0 / (shape[0] + shape[1]))
        return jax.random.uniform(k, shape, jnp.float32, -lim, lim)

    keys = jax.random.split(key, 16)
    p = {
        # BatchNorm init per module: weight=1, bias=1e-4 (kept 2D for TPU layout)
        "bn_feat_g": jnp.ones((1, num_features), jnp.float32),
        "bn_feat_b": jnp.full((1, num_features), 1e-4, jnp.float32),
        "conv_feat_w": glorot(keys[0], (num_features, hidden)),
        "bn_hidden_g": jnp.ones((1, hidden), jnp.float32),
        "bn_hidden_b": jnp.full((1, hidden), 1e-4, jnp.float32),
        "bn_fc0_g": jnp.ones((1, hidden), jnp.float32),
        "bn_fc0_b": jnp.full((1, hidden), 1e-4, jnp.float32),
        "lin0_w": glorot(keys[1], (hidden, hidden)),
        "lin0_b": 0.01 * jax.random.normal(keys[2], (1, hidden), jnp.float32),
        "lin_class_w": glorot(keys[3], (hidden, num_classes)),
        "lin_class_b": 0.01 * jax.random.normal(keys[4], (1, num_classes), jnp.float32),
    }
    for i in range(3):
        p[f"bn_conv{i}_g"] = jnp.ones((1, hidden), jnp.float32)
        p[f"bn_conv{i}_b"] = jnp.full((1, hidden), 1e-4, jnp.float32)
        p[f"conv{i}_w"] = glorot(keys[5 + 2 * i], (hidden, hidden))
        p[f"conv{i}_b"] = 0.01 * jax.random.normal(keys[6 + 2 * i], (1, hidden), jnp.float32)
    return p


if __name__ == "__main__":
    num_features, hidden, num_classes = 4, 32, 3
    num_graphs, nodes_per_graph = 8, 8
    N = num_graphs * nodes_per_graph

    key = jax.random.PRNGKey(0)
    k_x, k_p = jax.random.split(key)

    # Node features and graph assignment
    x = jax.random.normal(k_x, (N, num_features), jnp.float32)
    batch = jnp.repeat(jnp.arange(num_graphs, dtype=jnp.int32), nodes_per_graph)

    # Small undirected ring graph per example
    edges = []
    for g in range(num_graphs):
        base = g * nodes_per_graph
        for k in range(nodes_per_graph):
            a, b = base + k, base + (k + 1) % nodes_per_graph
            edges.append((a, b))
            edges.append((b, a))
    edge_index = jnp.array(edges, dtype=jnp.int32).T  # [2, E]

    adj = build_norm_adj(edge_index, N)               # glue: dense normalized A_hat
    pool_mat = build_pool_matrix(batch, num_graphs)   # glue: one-hot pooling matrix

    params = init_params(k_p, num_features, hidden, num_classes)

    out = gcnnet_forward(params, x, adj, pool_mat)
    out = jax.block_until_ready(out)

    ref = gcnnet_forward_ref(params, x, adj, pool_mat)
    assert out.shape == (num_graphs, num_classes)
    # bf16 MXU operands flowing through 6 batch-stat BatchNorm layers give a
    # few-percent deviation on the O(1) logits vs the f32 reference.
    assert jnp.allclose(out, ref, atol=1e-1, rtol=1e-1), "Pallas output mismatch vs reference"

    print("KERNEL_OK")
</pallas_src>

<mosaic_0001>
module attributes {stable_mosaic.version = 11 : i64} {
  func.func @gcnnet_fused_kernel(%arg0: memref<64x8xf32, #tpu.memory_space<vmem>>, %arg1: memref<64x64xbf16, #tpu.memory_space<vmem>>, %arg2: memref<8x64xbf16, #tpu.memory_space<vmem>>, %arg3: memref<2x8xf32, #tpu.memory_space<vmem>>, %arg4: memref<8x128xbf16, #tpu.memory_space<vmem>>, %arg5: memref<3x128x128xbf16, #tpu.memory_space<vmem>>, %arg6: memref<128x256xbf16, #tpu.memory_space<vmem>>, %arg7: memref<16x128xf32, #tpu.memory_space<vmem>>, %arg8: memref<8x128xf32, #tpu.memory_space<vmem>>) attributes {dimension_semantics = [], scalar_prefetch = 0 : i64, scratch_operands = 0 : i64, tpu.core_type = #tpu.core_type<tc>} {
    %c0 = arith.constant 0 : index
    %c0_0 = arith.constant 0 : index
    %0 = vector.load %arg1[%c0, %c0_0] : memref<64x64xbf16, #tpu.memory_space<vmem>>, vector<64x64xbf16>
    %c0_1 = arith.constant 0 : index
    %c0_2 = arith.constant 0 : index
    %1 = vector.load %arg7[%c0_1, %c0_2] : memref<16x128xf32, #tpu.memory_space<vmem>>, vector<16x128xf32>
    %c0_3 = arith.constant 0 : index
    %c0_4 = arith.constant 0 : index
    %2 = vector.load %arg3[%c0_3, %c0_4] : memref<2x8xf32, #tpu.memory_space<vmem>>, vector<2x8xf32>
    %c0_5 = arith.constant 0 : index
    %c0_6 = arith.constant 0 : index
    %3 = vector.load %arg0[%c0_5, %c0_6] : memref<64x8xf32, #tpu.memory_space<vmem>>, vector<64x8xf32>
    %4 = vector.extract_strided_slice %2 {offsets = [0, 0], sizes = [1, 8], strides = [1, 1]} : vector<2x8xf32> to vector<1x8xf32>
    %5 = vector.extract_strided_slice %2 {offsets = [1, 0], sizes = [1, 8], strides = [1, 1]} : vector<2x8xf32> to vector<1x8xf32>
    %cst = arith.constant dense<0.000000e+00> : vector<8xf32>
    %6 = vector.multi_reduction <add>, %3, %cst [0] : vector<64x8xf32> to vector<8xf32>
    %7 = vector.shape_cast %6 : vector<8xf32> to vector<1x8xf32>
    %cst_7 = arith.constant 1.562500e-02 : f32
    %8 = vector.broadcast %cst_7 : f32 to vector<1x8xf32>
    %9 = arith.mulf %7, %8 : vector<1x8xf32>
    %10 = arith.mulf %3, %3 : vector<64x8xf32>
    %cst_8 = arith.constant dense<0.000000e+00> : vector<8xf32>
    %11 = vector.multi_reduction <add>, %10, %cst_8 [0] : vector<64x8xf32> to vector<8xf32>
    %12 = vector.shape_cast %11 : vector<8xf32> to vector<1x8xf32>
    %cst_9 = arith.constant 1.562500e-02 : f32
    %13 = vector.broadcast %cst_9 : f32 to vector<1x8xf32>
    %14 = arith.mulf %12, %13 : vector<1x8xf32>
    %15 = arith.mulf %9, %9 : vector<1x8xf32>
    %16 = arith.subf %14, %15 : vector<1x8xf32>
    %cst_10 = arith.constant 9.99999974E-6 : f32
    %17 = vector.broadcast %cst_10 : f32 to vector<1x8xf32>
    %18 = arith.addf %16, %17 : vector<1x8xf32>
    %19 = math.rsqrt %18 : vector<1x8xf32>
    %20 = arith.mulf %4, %19 : vector<1x8xf32>
    %21 = arith.mulf %9, %20 : vector<1x8xf32>
    %22 = arith.subf %5, %21 : vector<1x8xf32>
    %23 = vector.broadcast %20 : vector<1x8xf32> to vector<64x8xf32>
    %24 = arith.mulf %3, %23 : vector<64x8xf32>
    %25 = vector.broadcast %22 : vector<1x8xf32> to vector<64x8xf32>
    %26 = arith.addf %24, %25 : vector<64x8xf32>
    %27 = arith.truncf %26 : vector<64x8xf32> to vector<64x8xbf16>
    %c0_11 = arith.constant 0 : index
    %c0_12 = arith.constant 0 : index
    %28 = vector.load %arg4[%c0_11, %c0_12] : memref<8x128xbf16, #tpu.memory_space<vmem>>, vector<8x128xbf16>
    %cst_13 = arith.constant dense<0.000000e+00> : vector<64x128xf32>
    %29 = tpu.matmul %27, %28, %cst_13 {dimension_numbers = #tpu.dot_dimension_numbers<[1], [0], [0], [1], [0, 0, 1, 1], [], []>} : vector<64x8xbf16>, vector<8x128xbf16>, vector<64x128xf32> -> vector<64x128xf32>
    %cst_14 = arith.constant 0.000000e+00 : f32
    %30 = vector.broadcast %cst_14 : f32 to vector<64x128xf32>
    %31 = arith.maximumf %29, %30 : vector<64x128xf32>
    %32 = vector.extract_strided_slice %1 {offsets = [0, 0], sizes = [1, 128], strides = [1, 1]} : vector<16x128xf32> to vector<1x128xf32>
    %33 = vector.extract_strided_slice %1 {offsets = [1, 0], sizes = [1, 128], strides = [1, 1]} : vector<16x128xf32> to vector<1x128xf32>
    %34 = vector.extract_strided_slice %1 {offsets = [2, 0], sizes = [1, 128], strides = [1, 1]} : vector<16x128xf32> to vector<1x128xf32>
    %cst_15 = arith.constant dense<0.000000e+00> : vector<128xf32>
    %35 = vector.multi_reduction <add>, %31, %cst_15 [0] : vector<64x128xf32> to vector<128xf32>
    %36 = vector.shape_cast %35 : vector<128xf32> to vector<1x128xf32>
    %cst_16 = arith.constant 1.562500e-02 : f32
    %37 = vector.broadcast %cst_16 : f32 to vector<1x128xf32>
    %38 = arith.mulf %36, %37 : vector<1x128xf32>
    %39 = arith.mulf %31, %31 : vector<64x128xf32>
    %cst_17 = arith.constant dense<0.000000e+00> : vector<128xf32>
    %40 = vector.multi_reduction <add>, %39, %cst_17 [0] : vector<64x128xf32> to vector<128xf32>
    %41 = vector.shape_cast %40 : vector<128xf32> to vector<1x128xf32>
    %cst_18 = arith.constant 1.562500e-02 : f32
    %42 = vector.broadcast %cst_18 : f32 to vector<1x128xf32>
    %43 = arith.mulf %41, %42 : vector<1x128xf32>
    %44 = arith.mulf %38, %38 : vector<1x128xf32>
    %45 = arith.subf %43, %44 : vector<1x128xf32>
    %cst_19 = arith.constant 9.99999974E-6 : f32
    %46 = vector.broadcast %cst_19 : f32 to vector<1x128xf32>
    %47 = arith.addf %45, %46 : vector<1x128xf32>
    %48 = math.rsqrt %47 : vector<1x128xf32>
    %49 = arith.mulf %32, %48 : vector<1x128xf32>
    %50 = arith.mulf %38, %49 : vector<1x128xf32>
    %51 = arith.subf %33, %50 : vector<1x128xf32>
    %52 = vector.broadcast %49 : vector<1x128xf32> to vector<64x128xf32>
    %53 = arith.mulf %31, %52 : vector<64x128xf32>
    %54 = vector.broadcast %51 : vector<1x128xf32> to vector<64x128xf32>
    %55 = arith.addf %53, %54 : vector<64x128xf32>
    %56 = arith.truncf %55 : vector<64x128xf32> to vector<64x128xbf16>
    %c0_20 = arith.constant 0 : index
    %c0_21 = arith.constant 0 : index
    %c0_22 = arith.constant 0 : index
    %57 = vector.load %arg5[%c0_20, %c0_21, %c0_22] : memref<3x128x128xbf16, #tpu.memory_space<vmem>>, vector<1x128x128xbf16>
    %58 = vector.shape_cast %57 : vector<1x128x128xbf16> to vector<128x128xbf16>
    %cst_23 = arith.constant dense<0.000000e+00> : vector<64x128xf32>
    %59 = tpu.matmul %56, %58, %cst_23 {dimension_numbers = #tpu.dot_dimension_numbers<[1], [0], [0], [1], [0, 0, 1, 1], [], []>} : vector<64x128xbf16>, vector<128x128xbf16>, vector<64x128xf32> -> vector<64x128xf32>
    %60 = arith.truncf %59 : vector<64x128xf32> to vector<64x128xbf16>
    %cst_24 = arith.constant dense<0.000000e+00> : vector<64x128xf32>
    %61 = tpu.matmul %0, %60, %cst_24 {dimension_numbers = #tpu.dot_dimension_numbers<[1], [0], [0], [1], [0, 0, 1, 1], [], []>} : vector<64x64xbf16>, vector<64x128xbf16>, vector<64x128xf32> -> vector<64x128xf32>
    %62 = vector.broadcast %34 : vector<1x128xf32> to vector<64x128xf32>
    %63 = arith.addf %61, %62 : vector<64x128xf32>
    %cst_25 = arith.constant 0.000000e+00 : f32
    %64 = vector.broadcast %cst_25 : f32 to vector<64x128xf32>
    %65 = arith.maximumf %63, %64 : vector<64x128xf32>
    %66 = vector.extract_strided_slice %1 {offsets = [3, 0], sizes = [1, 128], strides = [1, 1]} : vector<16x128xf32> to vector<1x128xf32>
    %67 = vector.extract_strided_slice %1 {offsets = [4, 0], sizes = [1, 128], strides = [1, 1]} : vector<16x128xf32> to vector<1x128xf32>
    %68 = vector.extract_strided_slice %1 {offsets = [5, 0], sizes = [1, 128], strides = [1, 1]} : vector<16x128xf32> to vector<1x128xf32>
    %cst_26 = arith.constant dense<0.000000e+00> : vector<128xf32>
    %69 = vector.multi_reduction <add>, %65, %cst_26 [0] : vector<64x128xf32> to vector<128xf32>
    %70 = vector.shape_cast %69 : vector<128xf32> to vector<1x128xf32>
    %cst_27 = arith.constant 1.562500e-02 : f32
    %71 = vector.broadcast %cst_27 : f32 to vector<1x128xf32>
    %72 = arith.mulf %70, %71 : vector<1x128xf32>
    %73 = arith.mulf %65, %65 : vector<64x128xf32>
    %cst_28 = arith.constant dense<0.000000e+00> : vector<128xf32>
    %74 = vector.multi_reduction <add>, %73, %cst_28 [0] : vector<64x128xf32> to vector<128xf32>
    %75 = vector.shape_cast %74 : vector<128xf32> to vector<1x128xf32>
    %cst_29 = arith.constant 1.562500e-02 : f32
    %76 = vector.broadcast %cst_29 : f32 to vector<1x128xf32>
    %77 = arith.mulf %75, %76 : vector<1x128xf32>
    %78 = arith.mulf %72, %72 : vector<1x128xf32>
    %79 = arith.subf %77, %78 : vector<1x128xf32>
    %cst_30 = arith.constant 9.99999974E-6 : f32
    %80 = vector.broadcast %cst_30 : f32 to vector<1x128xf32>
    %81 = arith.addf %79, %80 : vector<1x128xf32>
    %82 = math.rsqrt %81 : vector<1x128xf32>
    %83 = arith.mulf %66, %82 : vector<1x128xf32>
    %84 = arith.mulf %72, %83 : vector<1x128xf32>
    %85 = arith.subf %67, %84 : vector<1x128xf32>
    %86 = vector.broadcast %83 : vector<1x128xf32> to vector<64x128xf32>
    %87 = arith.mulf %65, %86 : vector<64x128xf32>
    %88 = vector.broadcast %85 : vector<1x128xf32> to vector<64x128xf32>
    %89 = arith.addf %87, %88 : vector<64x128xf32>
    %90 = arith.truncf %89 : vector<64x128xf32> to vector<64x128xbf16>
    %c1 = arith.constant 1 : index
    %c0_31 = arith.constant 0 : index
    %c0_32 = arith.constant 0 : index
    %91 = vector.load %arg5[%c1, %c0_31, %c0_32] : memref<3x128x128xbf16, #tpu.memory_space<vmem>>, vector<1x128x128xbf16>
    %92 = vector.shape_cast %91 : vector<1x128x128xbf16> to vector<128x128xbf16>
    %cst_33 = arith.constant dense<0.000000e+00> : vector<64x128xf32>
    %93 = tpu.matmul %90, %92, %cst_33 {dimension_numbers = #tpu.dot_dimension_numbers<[1], [0], [0], [1], [0, 0, 1, 1], [], []>} : vector<64x128xbf16>, vector<128x128xbf16>, vector<64x128xf32> -> vector<64x128xf32>
    %94 = arith.truncf %93 : vector<64x128xf32> to vector<64x128xbf16>
    %cst_34 = arith.constant dense<0.000000e+00> : vector<64x128xf32>
    %95 = tpu.matmul %0, %94, %cst_34 {dimension_numbers = #tpu.dot_dimension_numbers<[1], [0], [0], [1], [0, 0, 1, 1], [], []>} : vector<64x64xbf16>, vector<64x128xbf16>, vector<64x128xf32> -> vector<64x128xf32>
    %96 = vector.broadcast %68 : vector<1x128xf32> to vector<64x128xf32>
    %97 = arith.addf %95, %96 : vector<64x128xf32>
    %cst_35 = arith.constant 0.000000e+00 : f32
    %98 = vector.broadcast %cst_35 : f32 to vector<64x128xf32>
    %99 = arith.maximumf %97, %98 : vector<64x128xf32>
    %100 = vector.extract_strided_slice %1 {offsets = [6, 0], sizes = [1, 128], strides = [1, 1]} : vector<16x128xf32> to vector<1x128xf32>
    %101 = vector.extract_strided_slice %1 {offsets = [7, 0], sizes = [1, 128], strides = [1, 1]} : vector<16x128xf32> to vector<1x128xf32>
    %102 = vector.extract_strided_slice %1 {offsets = [8, 0], sizes = [1, 128], strides = [1, 1]} : vector<16x128xf32> to vector<1x128xf32>
    %cst_36 = arith.constant dense<0.000000e+00> : vector<128xf32>
    %103 = vector.multi_reduction <add>, %99, %cst_36 [0] : vector<64x128xf32> to vector<128xf32>
    %104 = vector.shape_cast %103 : vector<128xf32> to vector<1x128xf32>
    %cst_37 = arith.constant 1.562500e-02 : f32
    %105 = vector.broadcast %cst_37 : f32 to vector<1x128xf32>
    %106 = arith.mulf %104, %105 : vector<1x128xf32>
    %107 = arith.mulf %99, %99 : vector<64x128xf32>
    %cst_38 = arith.constant dense<0.000000e+00> : vector<128xf32>
    %108 = vector.multi_reduction <add>, %107, %cst_38 [0] : vector<64x128xf32> to vector<128xf32>
    %109 = vector.shape_cast %108 : vector<128xf32> to vector<1x128xf32>
    %cst_39 = arith.constant 1.562500e-02 : f32
    %110 = vector.broadcast %cst_39 : f32 to vector<1x128xf32>
    %111 = arith.mulf %109, %110 : vector<1x128xf32>
    %112 = arith.mulf %106, %106 : vector<1x128xf32>
    %113 = arith.subf %111, %112 : vector<1x128xf32>
    %cst_40 = arith.constant 9.99999974E-6 : f32
    %114 = vector.broadcast %cst_40 : f32 to vector<1x128xf32>
    %115 = arith.addf %113, %114 : vector<1x128xf32>
    %116 = math.rsqrt %115 : vector<1x128xf32>
    %117 = arith.mulf %100, %116 : vector<1x128xf32>
    %118 = arith.mulf %106, %117 : vector<1x128xf32>
    %119 = arith.subf %101, %118 : vector<1x128xf32>
    %120 = vector.broadcast %117 : vector<1x128xf32> to vector<64x128xf32>
    %121 = arith.mulf %99, %120 : vector<64x128xf32>
    %122 = vector.broadcast %119 : vector<1x128xf32> to vector<64x128xf32>
    %123 = arith.addf %121, %122 : vector<64x128xf32>
    %124 = arith.truncf %123 : vector<64x128xf32> to vector<64x128xbf16>
    %c2 = arith.constant 2 : index
    %c0_41 = arith.constant 0 : index
    %c0_42 = arith.constant 0 : index
    %125 = vector.load %arg5[%c2, %c0_41, %c0_42] : memref<3x128x128xbf16, #tpu.memory_space<vmem>>, vector<1x128x128xbf16>
    %126 = vector.shape_cast %125 : vector<1x128x128xbf16> to vector<128x128xbf16>
    %cst_43 = arith.constant dense<0.000000e+00> : vector<64x128xf32>
    %127 = tpu.matmul %124, %126, %cst_43 {dimension_numbers = #tpu.dot_dimension_numbers<[1], [0], [0], [1], [0, 0, 1, 1], [], []>} : vector<64x128xbf16>, vector<128x128xbf16>, vector<64x128xf32> -> vector<64x128xf32>
    %128 = arith.truncf %127 : vector<64x128xf32> to vector<64x128xbf16>
    %cst_44 = arith.constant dense<0.000000e+00> : vector<64x128xf32>
    %129 = tpu.matmul %0, %128, %cst_44 {dimension_numbers = #tpu.dot_dimension_numbers<[1], [0], [0], [1], [0, 0, 1, 1], [], []>} : vector<64x64xbf16>, vector<64x128xbf16>, vector<64x128xf32> -> vector<64x128xf32>
    %130 = vector.broadcast %102 : vector<1x128xf32> to vector<64x128xf32>
    %131 = arith.addf %129, %130 : vector<64x128xf32>
    %cst_45 = arith.constant 0.000000e+00 : f32
    %132 = vector.broadcast %cst_45 : f32 to vector<64x128xf32>
    %133 = arith.maximumf %131, %132 : vector<64x128xf32>
    %c0_46 = arith.constant 0 : index
    %c0_47 = arith.constant 0 : index
    %134 = vector.load %arg2[%c0_46, %c0_47] : memref<8x64xbf16, #tpu.memory_space<vmem>>, vector<8x64xbf16>
    %135 = arith.truncf %133 : vector<64x128xf32> to vector<64x128xbf16>
    %cst_48 = arith.constant dense<0.000000e+00> : vector<8x128xf32>
    %136 = tpu.matmul %134, %135, %cst_48 {dimension_numbers = #tpu.dot_dimension_numbers<[1], [0], [0], [1], [0, 0, 1, 1], [], []>} : vector<8x64xbf16>, vector<64x128xbf16>, vector<8x128xf32> -> vector<8x128xf32>
    %137 = vector.extract_strided_slice %1 {offsets = [9, 0], sizes = [1, 128], strides = [1, 1]} : vector<16x128xf32> to vector<1x128xf32>
    %138 = vector.extract_strided_slice %1 {offsets = [10, 0], sizes = [1, 128], strides = [1, 1]} : vector<16x128xf32> to vector<1x128xf32>
    %cst_49 = arith.constant dense<0.000000e+00> : vector<128xf32>
    %139 = vector.multi_reduction <add>, %136, %cst_49 [0] : vector<8x128xf32> to vector<128xf32>
    %140 = vector.shape_cast %139 : vector<128xf32> to vector<1x128xf32>
    %cst_50 = arith.constant 1.250000e-01 : f32
    %141 = vector.broadcast %cst_50 : f32 to vector<1x128xf32>
    %142 = arith.mulf %140, %141 : vector<1x128xf32>
    %143 = arith.mulf %136, %136 : vector<8x128xf32>
    %cst_51 = arith.constant dense<0.000000e+00> : vector<128xf32>
    %144 = vector.multi_reduction <add>, %143, %cst_51 [0] : vector<8x128xf32> to vector<128xf32>
    %145 = vector.shape_cast %144 : vector<128xf32> to vector<1x128xf32>
    %cst_52 = arith.constant 1.250000e-01 : f32
    %146 = vector.broadcast %cst_52 : f32 to vector<1x128xf32>
    %147 = arith.mulf %145, %146 : vector<1x128xf32>
    %148 = arith.mulf %142, %142 : vector<1x128xf32>
    %149 = arith.subf %147, %148 : vector<1x128xf32>
    %cst_53 = arith.constant 9.99999974E-6 : f32
    %150 = vector.broadcast %cst_53 : f32 to vector<1x128xf32>
    %151 = arith.addf %149, %150 : vector<1x128xf32>
    %152 = math.rsqrt %151 : vector<1x128xf32>
    %153 = arith.mulf %137, %152 : vector<1x128xf32>
    %154 = arith.mulf %142, %153 : vector<1x128xf32>
    %155 = arith.subf %138, %154 : vector<1x128xf32>
    %156 = vector.broadcast %153 : vector<1x128xf32> to vector<8x128xf32>
    %157 = arith.mulf %136, %156 : vector<8x128xf32>
    %158 = vector.broadcast %155 : vector<1x128xf32> to vector<8x128xf32>
    %159 = arith.addf %157, %158 : vector<8x128xf32>
    %160 = arith.truncf %159 : vector<8x128xf32> to vector<8x128xbf16>
    %c0_54 = arith.constant 0 : index
    %c0_55 = arith.constant 0 : index
    %161 = vector.load %arg6[%c0_54, %c0_55] : memref<128x256xbf16, #tpu.memory_space<vmem>>, vector<128x128xbf16>
    %cst_56 = arith.constant dense<0.000000e+00> : vector<8x128xf32>
    %162 = tpu.matmul %160, %161, %cst_56 {dimension_numbers = #tpu.dot_dimension_numbers<[1], [0], [0], [1], [0, 0, 1, 1], [], []>} : vector<8x128xbf16>, vector<128x128xbf16>, vector<8x128xf32> -> vector<8x128xf32>
    %163 = vector.extract_strided_slice %1 {offsets = [11, 0], sizes = [1, 128], strides = [1, 1]} : vector<16x128xf32> to vector<1x128xf32>
    %164 = vector.broadcast %163 : vector<1x128xf32> to vector<8x128xf32>
    %165 = arith.addf %162, %164 : vector<8x128xf32>
    %cst_57 = arith.constant 0.000000e+00 : f32
    %166 = vector.broadcast %cst_57 : f32 to vector<8x128xf32>
    %167 = arith.maximumf %165, %166 : vector<8x128xf32>
    %168 = vector.extract_strided_slice %1 {offsets = [12, 0], sizes = [1, 128], strides = [1, 1]} : vector<16x128xf32> to vector<1x128xf32>
    %169 = vector.extract_strided_slice %1 {offsets = [13, 0], sizes = [1, 128], strides = [1, 1]} : vector<16x128xf32> to vector<1x128xf32>
    %cst_58 = arith.constant dense<0.000000e+00> : vector<128xf32>
    %170 = vector.multi_reduction <add>, %167, %cst_58 [0] : vector<8x128xf32> to vector<128xf32>
    %171 = vector.shape_cast %170 : vector<128xf32> to vector<1x128xf32>
    %cst_59 = arith.constant 1.250000e-01 : f32
    %172 = vector.broadcast %cst_59 : f32 to vector<1x128xf32>
    %173 = arith.mulf %171, %172 : vector<1x128xf32>
    %174 = arith.mulf %167, %167 : vector<8x128xf32>
    %cst_60 = arith.constant dense<0.000000e+00> : vector<128xf32>
    %175 = vector.multi_reduction <add>, %174, %cst_60 [0] : vector<8x128xf32> to vector<128xf32>
    %176 = vector.shape_cast %175 : vector<128xf32> to vector<1x128xf32>
    %cst_61 = arith.constant 1.250000e-01 : f32
    %177 = vector.broadcast %cst_61 : f32 to vector<1x128xf32>
    %178 = arith.mulf %176, %177 : vector<1x128xf32>
    %179 = arith.mulf %173, %173 : vector<1x128xf32>
    %180 = arith.subf %178, %179 : vector<1x128xf32>
    %cst_62 = arith.constant 9.99999974E-6 : f32
    %181 = vector.broadcast %cst_62 : f32 to vector<1x128xf32>
    %182 = arith.addf %180, %181 : vector<1x128xf32>
    %183 = math.rsqrt %182 : vector<1x128xf32>
    %184 = arith.mulf %168, %183 : vector<1x128xf32>
    %185 = arith.mulf %173, %184 : vector<1x128xf32>
    %186 = arith.subf %169, %185 : vector<1x128xf32>
    %187 = vector.broadcast %184 : vector<1x128xf32> to vector<8x128xf32>
    %188 = arith.mulf %167, %187 : vector<8x128xf32>
    %189 = vector.broadcast %186 : vector<1x128xf32> to vector<8x128xf32>
    %190 = arith.addf %188, %189 : vector<8x128xf32>
    %191 = arith.truncf %190 : vector<8x128xf32> to vector<8x128xbf16>
    %c0_63 = arith.constant 0 : index
    %c128 = arith.constant 128 : index
    %192 = vector.load %arg6[%c0_63, %c128] : memref<128x256xbf16, #tpu.memory_space<vmem>>, vector<128x128xbf16>
    %cst_64 = arith.constant dense<0.000000e+00> : vector<8x128xf32>
    %193 = tpu.matmul %191, %192, %cst_64 {dimension_numbers = #tpu.dot_dimension_numbers<[1], [0], [0], [1], [0, 0, 1, 1], [], []>} : vector<8x128xbf16>, vector<128x128xbf16>, vector<8x128xf32> -> vector<8x128xf32>
    %194 = vector.extract_strided_slice %1 {offsets = [14, 0], sizes = [1, 128], strides = [1, 1]} : vector<16x128xf32> to vector<1x128xf32>
    %195 = vector.broadcast %194 : vector<1x128xf32> to vector<8x128xf32>
    %196 = arith.addf %193, %195 : vector<8x128xf32>
    %c0_65 = arith.constant 0 : index
    %c0_66 = arith.constant 0 : index
    %197 = vector.load %arg8[%c0_65, %c0_66] : memref<8x128xf32, #tpu.memory_space<vmem>>, vector<8x128xf32>
    tpu.vector_store %arg8[%c0_65, %c0_66], %196 {strides = array<i32>} : memref<8x128xf32, #tpu.memory_space<vmem>>, vector<8x128xf32>,
    return
  }
}

</mosaic_0001>

<bundles_post_ra>
// kernel: tpu_custom_call.1
= control target key start
LH: loop header
LB: loop body
LE: loop exit
PB: predicated region body
PF: predicated region fallthrough
CT: control target
= control target key end

     0   :  { %13 = vsyncpa [#allocation3], 0  ;;  %s2311_s0 = inlined_call_operand.vmem [shape: f32[64,8], index: 0, kind: input, shape index: {}]   ;;  %s2312_s1 = inlined_call_operand.vmem [shape: bf16[64,64], index: 1, kind: input, shape index: {}]   ;;  %s2313_s2 = inlined_call_operand.vmem [shape: bf16[8,64], index: 2, kind: input, shape index: {}]   ;;  %s2314_s3 = inlined_call_operand.vmem [shape: f32[2,8], index: 3, kind: input, shape index: {}]   ;;  %s2315_s4 = inlined_call_operand.vmem [shape: bf16[8,128], index: 4, kind: input, shape index: {}]   ;;  %s2316_s5 = inlined_call_operand.hbm [shape: bf16[3,128,128], index: 5, kind: input, shape index: {}]   ;;  %s2317_s6 = inlined_call_operand.hbm [shape: bf16[128,256], index: 6, kind: input, shape index: {}]   ;;  %s2318_s7 = inlined_call_operand.vmem [shape: f32[16,128], index: 7, kind: input, shape index: {}]   ;;  %s2319_s8 = inlined_call_operand.hbm [shape: f32[8,128], index: 8, kind: output, shape index: {}]  }
   0x1   :  { %14 = vsyncpa [#allocation6], 0 }
   0x2   :  { %15 = vsyncpa [#allocation4], 0  ;;  %s1963_s27 = smov [#allocation2]  }
   0x3   :  { %s31_s28 = sshll.u32 %s1963_s27, 4  ;;  %s32_s28 = int_to_ptr.vmem [resolvable:$true] %s31_s28 }
   0x4   :  { %s1905_s29 = scalar_lea.vmem %s32_s28, 3072  ;;  %p1910_p1 = scmp.lt.s32.totalorder %s32_s28, %s32_s28 }
   0x5   :  { %p1906_p0 = scmp.ne.s32.totalorder %s32_s28, %s1905_s29  ;;  %p1911_p2 = scmp.lt.s32.totalorder %s1905_s29, %s1905_s29 }
   0x7   :  { %p1912_p3 = por %p1911_p2, %p1910_p1 }
   0x9   :  { %p1913_p4 = pnand %p1912_p3, %p1906_p0 }
   0xb   :  { %1916 = shalt.err (!%p1913_p4)
}
   0xc   :  { %s1964_s30 = smov 64   ;;  %s1965_s9 = smov 4  }
   0xd   :  { %37 = dma.hbm_to_vmem [thread:$0]  %s2316_s5, 3072, %s32_s28, [#allocation3], %s1964_s30, %s1964_s30, %s1965_s9  }
   0xe   :  { %s1966_s12 = smov [#allocation5]  }
   0xf   :  { %s43_s13 = sshll.u32 %s1966_s12, 4  ;;  %s44_s13 = int_to_ptr.vmem [resolvable:$true] %s43_s13 }
  0x10   :  { %s1925_s14 = scalar_lea.vmem %s44_s13, 2048  ;;  %p1930_p6 = scmp.lt.s32.totalorder %s44_s13, %s44_s13 }
  0x11   :  { %p1926_p5 = scmp.ne.s32.totalorder %s44_s13, %s1925_s14  ;;  %p1931_p7 = scmp.lt.s32.totalorder %s1925_s14, %s1925_s14 }
  0x13   :  { %p1932_p8 = por %p1931_p7, %p1930_p6 }
  0x15   :  { %p1933_p9 = pnand %p1932_p8, %p1926_p5 }
  0x17   :  { %1936 = shalt.err (!%p1933_p9)
}
  0x18   :  { %s1967_s15 = smov 128   ;;  %s1968_s16 = smov 8  }
  0x19   :  { %49 = dma.hbm_to_vmem [thread:$0]  %s2317_s6, 2048, %s44_s13, [#allocation6], %s1967_s15, %s1967_s15, %s1968_s16  }
  0x1a   :  { %1957 = dma.done.wait [#allocation3], 3072  }
  0x1b   :  { %1958 = vsyncadd [#allocation3], 4294964224 }
  0x1c   :  { %1959 = dma.done.wait [#allocation6], 2048  }
  0x1d   :  { %1960 = vsyncadd [#allocation6], 4294965248  ;;  %vm182_vm0 = vcmask 1043456   ;;  %vm78_vm1 = vcmask 64512   ;;  %v169_v0 = vld [vmem:[%s2315_s4] sm:$0xf] }
  0x1e   :  { %v2029_v1 = vld [vmem:[%s2311_s0] sm:$0xff]  ;;  %1831 = vmatprep.subr.msk.bf16.mxu0 %vm182_vm0, %v169_v0  ;;  %v184_v2 = vsel %vm182_vm0, %v169_v0, 0  ;;  %v2034_v3 = vld [vmem:[%s2311_s0 + $0x8] sm:$0xff]  ;;  %v2039_v4 = vld [vmem:[%s2311_s0 + $0x10] sm:$0xff]  ;;  %vm490_vm2 = vcmask 523264   ;;  %vm1970_vm3 = vmmov 0  }
  0x1f   :  { %v2044_v5 = vld [vmem:[%s2311_s0 + $0x18] sm:$0xff]  ;;  %v79_v6 = vsel %vm78_vm1, %v2029_v1, 0.0  ;;  %v101_v7 = vmul.f32 %v2029_v1, %v2029_v1  ;;  %1650 = vmatpush3.bf16.msra.mxu0 %v184_v2  ;;  %v2053_v8 = vld [vmem:[%s2311_s0 + $0x20] sm:$0xff]  ;;  %v2058_v9 = vld [vmem:[%s2311_s0 + $0x28] sm:$0xff]  ;;  %v80_v11 = vsel %vm78_vm1, %v2034_v3, 0.0  ;;  %v82_v12 = vsel %vm78_vm1, %v2039_v4, 0.0 }
  0x20   :  { %v2063_v10 = vld [vmem:[%s2311_s0 + $0x30] sm:$0xff]  ;;  %v84_v13 = vsel %vm78_vm1, %v2044_v5, 0.0  ;;  %v102_v14 = vmul.f32 %v2034_v3, %v2034_v3  ;;  %v2076_v15 = vld [vmem:[%s2311_s0 + $0x38] sm:$0xff]  ;;  %v81_v16 = vadd.f32 %v80_v11, %v79_v6  ;;  %v86_v17 = vsel %vm78_vm1, %v2053_v8, 0.0 }
  0x21   :  { %v88_v18 = vsel %vm78_vm1, %v2058_v9, 0.0  ;;  %v90_v19 = vsel %vm78_vm1, %v2063_v10, 0.0  ;;  %v92_v20 = vsel %vm78_vm1, %v2076_v15, 0.0  ;;  %v103_v21 = vmul.f32 %v2039_v4, %v2039_v4 }
  0x22   :  { %v104_v22 = vmul.f32 %v2044_v5, %v2044_v5  ;;  %v105_v23 = vmul.f32 %v2053_v8, %v2053_v8  ;;  %v83_v24 = vadd.f32 %v82_v12, %v81_v16  ;;  %v106_v25 = vmul.f32 %v2058_v9, %v2058_v9 }
  0x23   :  { %v107_v26 = vmul.f32 %v2063_v10, %v2063_v10  ;;  %v108_v27 = vmul.f32 %v2076_v15, %v2076_v15  ;;  %v109_v28 = vsel %vm78_vm1, %v101_v7, 0.0  ;;  %v110_v29 = vsel %vm78_vm1, %v102_v14, 0.0  ;;  %v69_v7 = vld [vmem:[%s2314_s3] sm:$0x3] }
  0x24   :  { %v112_v30 = vsel %vm78_vm1, %v103_v21, 0.0  ;;  %v114_v31 = vsel %vm78_vm1, %v104_v22, 0.0  ;;  %v85_v32 = vadd.f32 %v84_v13, %v83_v24  ;;  %v111_v33 = vadd.f32 %v110_v29, %v109_v28 }
  0x25   :  { %v116_v34 = vsel %vm78_vm1, %v105_v23, 0.0  ;;  %v118_v35 = vsel %vm78_vm1, %v106_v25, 0.0  ;;  %v120_v36 = vsel %vm78_vm1, %v107_v26, 0.0  ;;  %v122_v37 = vsel %vm78_vm1, %v108_v27, 0.0 }
  0x26   :  { %v87_v38 = vadd.f32 %v86_v17, %v85_v32  ;;  %v113_v39 = vadd.f32 %v112_v30, %v111_v33  ;;  %v141_v2 = vlaneseq }
  0x28   :  { %v89_v40 = vadd.f32 %v88_v18, %v87_v38  ;;  %v115_v41 = vadd.f32 %v114_v31, %v113_v39  ;;  %v2106_v6 = vshrl.u32 %v141_v2, 7  ;;  %v1846_v38 = vld [vmem:[#allocation2 + $0x10] sm:$0xff]   ;;  %v1847_v39 = vld [vmem:[#allocation2 + $0x8] sm:$0xff]  }
  0x2a   :  { %v91_v42 = vadd.f32 %v90_v19, %v89_v40  ;;  %v117_v43 = vadd.f32 %v116_v34, %v115_v41  ;;  %v2112_v11 = vsub.s32 0, %v2106_v6  ;;  %v2116_v18 = vsub.s32 1, %v2106_v6  ;;  %v1848_v40 = vld [vmem:[#allocation2] sm:$0xff]  }
  0x2c   :  { %v93_v44 = vadd.f32 %v92_v20, %v91_v42  ;;  %v119_v45 = vadd.f32 %v118_v35, %v117_v43  ;;  %v1841_v35 = vld [vmem:[#allocation2 + $0x38] sm:$0xff]  }
  0x2d   :  { %1659 = vmatprep.subr.bf16.mxu1 %v1841_v35 }
  0x2e   :  { %v94_v46 = vrot.slane %v93_v44, 4  ;;  %v121_v47 = vadd.f32 %v120_v36, %v119_v45  ;;  %1660 = vmatpush3.bf16.msra.mxu1 %v1841_v35  ;;  %v1844_v36 = vld [vmem:[#allocation2 + $0x20] sm:$0xff]  }
  0x30   :  { %v95_v48 = vadd.f32 %v94_v46, %v93_v44  ;;  %v123_v49 = vadd.f32 %v122_v37, %v121_v47  ;;  %v1845_v37 = vld [vmem:[#allocation2 + $0x18] sm:$0xff]  }
  0x32   :  { %v96_v50 = vrot.slane %v95_v48, 2  ;;  %v124_v51 = vrot.slane %v123_v49, 4 }
  0x34   :  { %v97_v52 = vadd.f32 %v96_v50, %v95_v48  ;;  %v125_v53 = vadd.f32 %v124_v51, %v123_v49 }
  0x36   :  { %v98_v54 = vrot.slane %v97_v52, 1  ;;  %v126_v55 = vrot.slane %v125_v53, 2 }
  0x38   :  { %v99_v56 = vadd.f32 %v98_v54, %v97_v52  ;;  %v127_v57 = vadd.f32 %v126_v55, %v125_v53 }
  0x3a   :  { %v100_v58 = vmul.f32 0.015625, %v99_v56  ;;  %v128_v59 = vrot.slane %v127_v57, 1 }
  0x3c   :  { %v129_v60 = vadd.f32 %v128_v59, %v127_v57  ;;  %v131_v61 = vmul.f32 %v100_v58, %v100_v58 }
  0x3e   :  { %v130_v62 = vmul.f32 0.015625, %v129_v60 }
  0x40   :  { %v132_v63 = vsub.f32 %v130_v62, %v131_v61 }
  0x42   :  { %v133_v0 = vadd.f32 1e-05, %v132_v63 }
  0x44   :  { %1885 = vrsqrt.f32 %v133_v0 }
  0x51   :  { %v1886_v12 = vpop.eup %1885 }
  0x52   :  { %v135_v13 = vmul.f32 %v1886_v12, %v69_v7 }
  0x54   :  { %v136_v14 = vmul.f32 %v135_v13, %v100_v58  ;;  %v144_v16 = vrot.slane %v135_v13, %v2112_v11 }
  0x56   :  { %v138_v17 = vrot.slane %v136_v14, 7  ;;  %v145_v19 = vmul.f32 %v144_v16, %v2029_v1  ;;  %v146_v21 = vmul.f32 %v144_v16, %v2034_v3  ;;  %v147_v22 = vmul.f32 %v144_v16, %v2039_v4 }
  0x57   :  { %v148_v23 = vmul.f32 %v144_v16, %v2044_v5  ;;  %v149_v24 = vmul.f32 %v144_v16, %v2053_v8  ;;  %v150_v25 = vmul.f32 %v144_v16, %v2058_v9  ;;  %v151_v1 = vmul.f32 %v144_v16, %v2063_v10  ;;  %v1842_v10 = vld [vmem:[#allocation2 + $0x30] sm:$0xff]  }
  0x58   :  { %v140_v20 = vsub.f32 %v69_v7, %v138_v17  ;;  %v152_v3 = vmul.f32 %v144_v16, %v2076_v15  ;;  %1661 = vmatprep.subr.bf16.mxu1 %v1842_v10  ;;  %v1843_v15 = vld [vmem:[#allocation2 + $0x28] sm:$0xff]  }
  0x59   :  { %1662 = vmatpush3.bf16.msra.mxu1 %v1842_v10 }
  0x5a   :  { %v156_v26 = vrot.slane %v140_v20, %v2116_v18  ;;  %1663 = vmatprep.subr.bf16.mxu1 %v1843_v15 }
  0x5c   :  { %v157_v27 = vadd.f32 %v156_v26, %v145_v19  ;;  %v158_v28 = vadd.f32 %v156_v26, %v146_v21  ;;  %v159_v29 = vadd.f32 %v156_v26, %v147_v22  ;;  %v160_v30 = vadd.f32 %v156_v26, %v148_v23 }
  0x5d   :  { %v161_v31 = vadd.f32 %v156_v26, %v149_v24  ;;  %v162_v32 = vadd.f32 %v156_v26, %v150_v25  ;;  %v163_v5 = vadd.f32 %v156_v26, %v151_v1  ;;  %v164_v8 = vadd.f32 %v156_v26, %v152_v3  ;;  %1664 = vmatpush3.bf16.msra.mxu1 %v1843_v15  ;;  %v2134_v15 = vld [vmem:[%s2318_s7] sm:$0xff] }
  0x5e   :  { %v165_v33 = vpack.c.bf16 %v158_v28, %v157_v27  ;;  %v166_v4 = vpack.c.bf16 %v160_v30, %v159_v29  ;;  %1665 = vmatprep.subr.bf16.mxu1 %v1844_v36 }
  0x5f   :  { %v167_v34 = vpack.c.bf16 %v162_v32, %v161_v31  ;;  %v168_v9 = vpack.c.bf16 %v164_v8, %v163_v5 }
  0x60   :  { %1651 = vmatprep.mubr.msk.bf16.mxu0 %vm78_vm1, %v165_v33 }
  0x61   :  { %1652 = vmatmul.mubr.msk.bf16.vlgmr.msra.gmra.mxu0 %vm78_vm1, %v166_v4  ;;  %1666 = vmatpush3.bf16.msra.mxu1 %v1844_v36 }
  0x62   :  { %1655 = vmatprep.mubr.msk.bf16.mxu0 %vm78_vm1, %v167_v34  ;;  %1667 = vmatprep.subr.bf16.mxu1 %v1845_v37 }
  0x65   :  { %1668 = vmatpush3.bf16.msra.mxu1 %v1845_v37 }
  0x66   :  { %1669 = vmatprep.subr.bf16.mxu1 %v1846_v38 }
  0x69   :  { %1656 = vmatmul.mubr.msk.bf16.gmra.mxu0 %vm78_vm1, %v168_v9  ;;  %1670 = vmatpush3.bf16.msra.mxu1 %v1846_v38 }
  0x6a   :  { %1671 = vmatprep.subr.bf16.mxu1 %v1847_v39 }
  0x6d   :  { %1672 = vmatpush3.bf16.msra.mxu1 %v1847_v39 }
  0x6e   :  { %1673 = vmatprep.subr.bf16.mxu1 %v1848_v40 }
  0x71   :  { %1674 = vmatpush3.bf16.msra.mxu1 %v1848_v40 }
 0x121   :  { %v1653_v41 = vpop.f32.mrf.mxu0 }
 0x122   :  { %v253_v46 = vmax.f32 %v1653_v41, 0.0 }
 0x123   :  { %v220_v42 = vpop.f32.mrf.mxu0 }
 0x124   :  { %v251_v44 = vmax.f32 %v220_v42, 0.0  ;;  %v275_v54 = vmul.f32 %v253_v46, %v253_v46 }
 0x125   :  { %v1654_v43 = vpop.f32.mrf.mxu0 }
 0x126   :  { %v273_v49 = vmul.f32 %v251_v44, %v251_v44  ;;  %v254_v50 = vmax.f32 %v1654_v43, 0.0 }
 0x127   :  { %v223_v45 = vpop.f32.mrf.mxu0 }
 0x128   :  { %v252_v47 = vmax.f32 %v223_v45, 0.0  ;;  %v276_v59 = vmul.f32 %v254_v50, %v254_v50 }
 0x129   :  { %v1657_v48 = vpop.f32.mrf.mxu0 }
 0x12a   :  { %v259_v51 = vadd.f32 %v252_v47, %v251_v44  ;;  %v274_v52 = vmul.f32 %v252_v47, %v252_v47  ;;  %v257_v62 = vmax.f32 %v1657_v48, 0.0 }
 0x12b   :  { %v236_v53 = vpop.f32.mrf.mxu0 }
 0x12c   :  { %v260_v55 = vadd.f32 %v259_v51, %v253_v46  ;;  %v281_v56 = vadd.f32 %v274_v52, %v273_v49  ;;  %v255_v57 = vmax.f32 %v236_v53, 0.0  ;;  %v279_v19 = vmul.f32 %v257_v62, %v257_v62 }
 0x12d   :  { %v1658_v58 = vpop.f32.mrf.mxu0 }
 0x12e   :  { %v282_v60 = vadd.f32 %v281_v56, %v275_v54  ;;  %v261_v61 = vadd.f32 %v260_v55, %v254_v50  ;;  %v277_v2 = vmul.f32 %v255_v57, %v255_v57  ;;  %v258_v14 = vmax.f32 %v1658_v58, 0.0 }
 0x12f   :  { %v239_v63 = vpop.f32.mrf.mxu0 }
 0x130   :  { %v262_v0 = vadd.f32 %v261_v61, %v255_v57  ;;  %v283_v7 = vadd.f32 %v282_v60, %v276_v59  ;;  %v256_v12 = vmax.f32 %v239_v63, 0.0  ;;  %v280_v22 = vmul.f32 %v258_v14, %v258_v14 }
 0x132   :  { %v284_v13 = vadd.f32 %v283_v7, %v277_v2  ;;  %v263_v16 = vadd.f32 %v262_v0, %v256_v12  ;;  %v278_v17 = vmul.f32 %v256_v12, %v256_v12 }
 0x134   :  { %v264_v20 = vadd.f32 %v263_v16, %v257_v62  ;;  %v285_v21 = vadd.f32 %v284_v13, %v278_v17 }
 0x136   :  { %v265_v23 = vadd.f32 %v264_v20, %v258_v14  ;;  %v286_v24 = vadd.f32 %v285_v21, %v279_v19 }
 0x138   :  { %v266_v25 = vrot.slane %v265_v23, 4  ;;  %v287_v26 = vadd.f32 %v286_v24, %v280_v22  ;;  %v2157_v24 = vld [vmem:[%s2312_s1 + $0x10] sm:$0xff]  }
 0x13a   :  { %v267_v27 = vadd.f32 %v266_v25, %v265_v23  ;;  %v288_v28 = vrot.slane %v287_v26, 4  ;;  %v2152_v23 = vld [vmem:[%s2312_s1 + $0x8] sm:$0xff]   ;;  %v2166_v25 = vld [vmem:[%s2312_s1 + $0x18] sm:$0xff]  }
 0x13c   :  { %v268_v29 = vrot.slane %v267_v27, 2  ;;  %v289_v30 = vadd.f32 %v288_v28, %v287_v26  ;;  %v1853_v26 = vld [vmem:[#allocation2 + $0x78] sm:$0xff]   ;;  %v1855_v28 = vld [vmem:[#allocation2 + $0x68] sm:$0xff]  }
 0x13e   :  { %v269_v31 = vadd.f32 %v268_v29, %v267_v27  ;;  %v290_v32 = vrot.slane %v289_v30, 2  ;;  %v1854_v27 = vld [vmem:[#allocation2 + $0x70] sm:$0xff]   ;;  %v1856_v29 = vld [vmem:[#allocation2 + $0x60] sm:$0xff]  }
 0x140   :  { %v270_v1 = vrot.slane %v269_v31, 1  ;;  %v291_v3 = vadd.f32 %v290_v32, %v289_v30  ;;  %v1857_v30 = vld [vmem:[#allocation2 + $0x58] sm:$0xff]   ;;  %v1859_v32 = vld [vmem:[#allocation2 + $0x48] sm:$0xff]  }
 0x142   :  { %v271_v33 = vadd.f32 %v270_v1, %v269_v31  ;;  %v292_v4 = vrot.slane %v291_v3, 1  ;;  %v1858_v31 = vld [vmem:[#allocation2 + $0x50] sm:$0xff]   ;;  %v1860_v1 = vld [vmem:[#allocation2 + $0x40] sm:$0xff]  }
 0x144   :  { %v272_v34 = vmul.f32 0.015625, %v271_v33  ;;  %v293_v5 = vadd.f32 %v292_v4, %v291_v3  ;;  %v468_v3 = vsub.s32 2, %v2106_v6 }
 0x146   :  { %v294_v8 = vmul.f32 0.015625, %v293_v5  ;;  %v295_v9 = vmul.f32 %v272_v34, %v272_v34  ;;  %v469_v4 = vrot.slane %v2134_v15, %v468_v3 }
 0x148   :  { %v296_v35 = vsub.f32 %v294_v8, %v295_v9 }
 0x14a   :  { %v297_v10 = vadd.f32 1e-05, %v296_v35 }
 0x14c   :  { %1887 = vrsqrt.f32 %v297_v10 }
 0x159   :  { %v1888_v36 = vpop.eup %1887 }
 0x15a   :  { %v299_v37 = vmul.f32 %v1888_v36, %v2134_v15 }
 0x15c   :  { %v300_v38 = vmul.f32 %v299_v37, %v272_v34  ;;  %v308_v39 = vrot.slane %v299_v37, %v2112_v11 }
 0x15e   :  { %v302_v40 = vrot.slane %v300_v38, 7  ;;  %v309_v42 = vmul.f32 %v308_v39, %v251_v44  ;;  %v310_v45 = vmul.f32 %v308_v39, %v252_v47  ;;  %v311_v48 = vmul.f32 %v308_v39, %v253_v46 }
 0x15f   :  { %v312_v49 = vmul.f32 %v308_v39, %v254_v50  ;;  %v314_v51 = vmul.f32 %v308_v39, %v256_v12  ;;  %v313_v52 = vmul.f32 %v308_v39, %v255_v57  ;;  %v315_v0 = vmul.f32 %v308_v39, %v257_v62  ;;  %v2143_v50 = vld [vmem:[%s2312_s1] sm:$0xff]  }
 0x160   :  { %v304_v41 = vsub.f32 %v2134_v15, %v302_v40  ;;  %v316_v44 = vmul.f32 %v308_v39, %v258_v14  ;;  %1691 = vmatprep.mubr.msk.bf16.mxu0 %vm490_vm2, %v2143_v50 }
 0x162   :  { %v320_v43 = vrot.slane %v304_v41, %v2116_v18 }
 0x164   :  { %v321_v53 = vadd.f32 %v320_v43, %v309_v42  ;;  %v322_v54 = vadd.f32 %v320_v43, %v310_v45  ;;  %v323_v55 = vadd.f32 %v320_v43, %v311_v48  ;;  %v324_v56 = vadd.f32 %v320_v43, %v312_v49 }
 0x165   :  { %v325_v58 = vadd.f32 %v320_v43, %v313_v52  ;;  %v326_v59 = vadd.f32 %v320_v43, %v314_v51  ;;  %v327_v2 = vadd.f32 %v320_v43, %v315_v0  ;;  %v328_v47 = vadd.f32 %v320_v43, %v316_v44 }
 0x166   :  { %v329_v60 = vpack.c.bf16 %v322_v54, %v321_v53  ;;  %v330_v61 = vpack.c.bf16 %v324_v56, %v323_v55 }
 0x167   :  { %v331_v63 = vpack.c.bf16 %v326_v59, %v325_v58  ;;  %v332_v46 = vpack.c.bf16 %v328_v47, %v327_v2 }
 0x168   :  { %1675 = vmatprep.mubr.bf16.mxu1 %v329_v60 }
 0x169   :  { %1676 = vmatmul.mubr.bf16.vlgmr.msra.gmra.mxu1 %v330_v61 }
 0x16a   :  { %1679 = vmatprep.mubr.bf16.mxu1 %v331_v63 }
 0x171   :  { %1680 = vmatmul.mubr.bf16.gmra.mxu1 %v332_v46 }
 0x172   :  { %1731 = vmatprep.mubr.msk.bf16.mxu1 %vm490_vm2, %v2143_v50 }
 0x229   :  { %v1677_v57 = vpop.f32.mrf.mxu1 }
 0x22b   :  { %v431_v62 = vpop.f32.mrf.mxu1 }
 0x22d   :  { %v1678_v7 = vpop.f32.mrf.mxu1 }
 0x22e   :  { %v463_v21 = vpack.c.bf16 %v1678_v7, %v1677_v57 }
 0x22f   :  { %v434_v12 = vpop.f32.mrf.mxu1 }
 0x230   :  { %v462_v22 = vpack.c.bf16 %v434_v12, %v431_v62 }
 0x231   :  { %v1681_v13 = vpop.f32.mrf.mxu1 }
 0x233   :  { %v447_v14 = vpop.f32.mrf.mxu1 }
 0x235   :  { %v1682_v16 = vpop.f32.mrf.mxu1 }
 0x236   :  { %v465_v17 = vpack.c.bf16 %v1682_v16, %v1681_v13 }
 0x237   :  { %v450_v19 = vpop.f32.mrf.mxu1 }
 0x238   :  { %v464_v20 = vpack.c.bf16 %v450_v19, %v447_v14  ;;  %1683 = vmatprep.subr.bf16.mxu0 %v465_v17 }
 0x239   :  { %1684 = vmatpush3.bf16.msra.mxu0 %v465_v17 }
 0x23a   :  { %1685 = vmatprep.subr.bf16.mxu0 %v464_v20 }
 0x23d   :  { %1686 = vmatpush3.bf16.msra.mxu0 %v464_v20 }
 0x23e   :  { %1687 = vmatprep.subr.bf16.mxu0 %v463_v21 }
 0x241   :  { %1688 = vmatpush3.bf16.msra.mxu0 %v463_v21 }
 0x242   :  { %1689 = vmatprep.subr.bf16.mxu0 %v462_v22 }
 0x245   :  { %1690 = vmatpush3.bf16.msra.mxu0 %v462_v22 }
 0x246   :  { %1699 = vmatprep.subr.bf16.mxu0 %v1853_v26 }
 0x248   :  { %1692 = vmatmul.mubr.msk.bf16.vlgmr.msra.gmra.mxu0 %vm490_vm2, %v2152_v23 }
 0x249   :  { %1695 = vmatprep.mubr.msk.bf16.mxu0 %vm490_vm2, %v2157_v24  ;;  %1700 = vmatpush3.bf16.msra.mxu0 %v1853_v26 }
 0x24a   :  { %1701 = vmatprep.subr.bf16.mxu0 %v1854_v27 }
 0x24d   :  { %1702 = vmatpush3.bf16.msra.mxu0 %v1854_v27 }
 0x24e   :  { %1703 = vmatprep.subr.bf16.mxu0 %v1855_v28 }
 0x250   :  { %1696 = vmatmul.mubr.msk.bf16.gmra.mxu0 %vm490_vm2, %v2166_v25 }
 0x251   :  { %1704 = vmatpush3.bf16.msra.mxu0 %v1855_v28 }
 0x252   :  { %1705 = vmatprep.subr.bf16.mxu0 %v1856_v29 }
 0x255   :  { %1706 = vmatpush3.bf16.msra.mxu0 %v1856_v29 }
 0x256   :  { %1707 = vmatprep.subr.bf16.mxu0 %v1857_v30 }
 0x259   :  { %1708 = vmatpush3.bf16.msra.mxu0 %v1857_v30 }
 0x25a   :  { %1709 = vmatprep.subr.bf16.mxu0 %v1858_v31 }
 0x25d   :  { %1710 = vmatpush3.bf16.msra.mxu0 %v1858_v31 }
 0x25e   :  { %1711 = vmatprep.subr.bf16.mxu0 %v1859_v32 }
 0x261   :  { %1712 = vmatpush3.bf16.msra.mxu0 %v1859_v32 }
 0x262   :  { %1713 = vmatprep.subr.bf16.mxu0 %v1860_v1 }
 0x265   :  { %1714 = vmatpush3.bf16.msra.mxu0 %v1860_v1 }
 0x308   :  { %v1693_v33 = vpop.f32.mrf.mxu0 }
 0x309   :  { %v546_v9 = vadd.f32 %v1693_v33, %v469_v4 }
 0x30a   :  { %v537_v34 = vpop.f32.mrf.mxu0 }
 0x30b   :  { %v538_v5 = vadd.f32 %v537_v34, %v469_v4  ;;  %v2176_v39 = vmax.f32 %v546_v9, 0.0 }
 0x30c   :  { %v1694_v8 = vpop.f32.mrf.mxu0 }
 0x30d   :  { %v549_v35 = vadd.f32 %v1694_v8, %v469_v4  ;;  %v2174_v36 = vmax.f32 %v538_v5, 0.0  ;;  %v592_v53 = vmul.f32 %v2176_v39, %v2176_v39 }
 0x30e   :  { %v540_v10 = vpop.f32.mrf.mxu0 }
 0x30f   :  { %v541_v37 = vadd.f32 %v540_v10, %v469_v4  ;;  %v2180_v41 = vmax.f32 %v549_v35, 0.0  ;;  %v590_v43 = vmul.f32 %v2174_v36, %v2174_v36 }
 0x310   :  { %v1697_v38 = vpop.f32.mrf.mxu0 }
 0x311   :  { %v2178_v40 = vmax.f32 %v541_v37, 0.0  ;;  %v562_v51 = vadd.f32 %v1697_v38, %v469_v4  ;;  %v593_v58 = vmul.f32 %v2180_v41, %v2180_v41 }
 0x312   :  { %v553_v42 = vpop.f32.mrf.mxu0 }
 0x313   :  { %v576_v45 = vadd.f32 %v2178_v40, %v2174_v36  ;;  %v591_v48 = vmul.f32 %v2178_v40, %v2178_v40  ;;  %v554_v49 = vadd.f32 %v553_v42, %v469_v4  ;;  %v574_v44 = vmax.f32 %v562_v51, 0.0 }
 0x314   :  { %v1698_v52 = vpop.f32.mrf.mxu0  ;;  %v624_v42 = vsub.s32 3, %v2106_v6  ;;  %v636_v51 = vsub.s32 4, %v2106_v6 }
 0x315   :  { %v577_v54 = vadd.f32 %v576_v45, %v2176_v39  ;;  %v598_v55 = vadd.f32 %v591_v48, %v590_v43  ;;  %v572_v56 = vmax.f32 %v554_v49, 0.0  ;;  %v565_v63 = vadd.f32 %v1698_v52, %v469_v4 }
 0x316   :  { %v556_v59 = vpop.f32.mrf.mxu0  ;;  %v596_v14 = vmul.f32 %v574_v44, %v574_v44 }
 0x317   :  { %v599_v60 = vadd.f32 %v598_v55, %v592_v53  ;;  %v578_v61 = vadd.f32 %v577_v54, %v2180_v41  ;;  %v557_v0 = vadd.f32 %v556_v59, %v469_v4  ;;  %v594_v47 = vmul.f32 %v572_v56, %v572_v56 }
 0x318   :  { %v575_v7 = vmax.f32 %v565_v63, 0.0 }
 0x319   :  { %v579_v2 = vadd.f32 %v578_v61, %v572_v56  ;;  %v600_v46 = vadd.f32 %v599_v60, %v593_v58  ;;  %v573_v57 = vmax.f32 %v557_v0, 0.0 }
 0x31a   :  { %v597_v19 = vmul.f32 %v575_v7, %v575_v7 }
 0x31b   :  { %v601_v62 = vadd.f32 %v600_v46, %v594_v47  ;;  %v580_v12 = vadd.f32 %v579_v2, %v573_v57  ;;  %v595_v13 = vmul.f32 %v573_v57, %v573_v57 }
 0x31d   :  { %v581_v16 = vadd.f32 %v580_v12, %v574_v44  ;;  %v602_v17 = vadd.f32 %v601_v62, %v595_v13 }
 0x31f   :  { %v582_v20 = vadd.f32 %v581_v16, %v575_v7  ;;  %v603_v21 = vadd.f32 %v602_v17, %v596_v14 }
 0x321   :  { %v583_v22 = vrot.slane %v582_v20, 4  ;;  %v604_v26 = vadd.f32 %v603_v21, %v597_v19 }
 0x323   :  { %v584_v27 = vadd.f32 %v583_v22, %v582_v20  ;;  %v605_v28 = vrot.slane %v604_v26, 4 }
 0x325   :  { %v585_v29 = vrot.slane %v584_v27, 2  ;;  %v606_v30 = vadd.f32 %v605_v28, %v604_v26 }
 0x327   :  { %v586_v31 = vadd.f32 %v585_v29, %v584_v27  ;;  %v607_v32 = vrot.slane %v606_v30, 2  ;;  %v1862_v29 = vld [vmem:[#allocation2 + $0xb0] sm:$0xff]  }
 0x329   :  { %v587_v1 = vrot.slane %v586_v31, 1  ;;  %v608_v33 = vadd.f32 %v607_v32, %v606_v30  ;;  %v1863_v30 = vld [vmem:[#allocation2 + $0xa8] sm:$0xff]   ;;  %v1865_v32 = vld [vmem:[#allocation2 + $0x98] sm:$0xff]  }
 0x32b   :  { %v588_v4 = vadd.f32 %v587_v1, %v586_v31  ;;  %v609_v34 = vrot.slane %v608_v33, 1  ;;  %v1864_v31 = vld [vmem:[#allocation2 + $0xa0] sm:$0xff]   ;;  %v1866_v1 = vld [vmem:[#allocation2 + $0x90] sm:$0xff]  }
 0x32d   :  { %v589_v5 = vmul.f32 0.015625, %v588_v4  ;;  %v610_v8 = vadd.f32 %v609_v34, %v608_v33  ;;  %v1867_v33 = vld [vmem:[#allocation2 + $0x88] sm:$0xff]   ;;  %v1868_v4 = vld [vmem:[#allocation2 + $0x80] sm:$0xff]   ;;  %v786_v34 = vsub.s32 5, %v2106_v6 }
 0x32f   :  { %v611_v9 = vmul.f32 0.015625, %v610_v8  ;;  %v612_v35 = vmul.f32 %v589_v5, %v589_v5  ;;  %v787_v8 = vrot.slane %v2134_v15, %v786_v34 }
 0x331   :  { %v613_v10 = vsub.f32 %v611_v9, %v612_v35 }
 0x333   :  { %v614_v37 = vadd.f32 1e-05, %v613_v10 }
 0x335   :  { %1889 = vrsqrt.f32 %v614_v37 }
 0x342   :  { %v1890_v38 = vpop.eup %1889 }
 0x343   :  { %v616_v43 = vmul.f32 %v1890_v38, %v2134_v15 }
 0x345   :  { %v617_v45 = vmul.f32 %v616_v43, %v589_v5  ;;  %v625_v48 = vrot.slane %v616_v43, %v624_v42 }
 0x347   :  { %v619_v49 = vrot.slane %v617_v45, 7  ;;  %v626_v53 = vmul.f32 %v625_v48, %v2174_v36  ;;  %v627_v55 = vmul.f32 %v625_v48, %v2178_v40  ;;  %v628_v58 = vmul.f32 %v625_v48, %v2176_v39 }
 0x348   :  { %v629_v59 = vmul.f32 %v625_v48, %v2180_v41  ;;  %v631_v60 = vmul.f32 %v625_v48, %v573_v57  ;;  %v630_v61 = vmul.f32 %v625_v48, %v572_v56  ;;  %v632_v14 = vmul.f32 %v625_v48, %v574_v44 }
 0x349   :  { %v621_v52 = vsub.f32 %v2134_v15, %v619_v49  ;;  %v633_v16 = vmul.f32 %v625_v48, %v575_v7 }
 0x34b   :  { %v637_v54 = vrot.slane %v621_v52, %v636_v51 }
 0x34d   :  { %v638_v63 = vadd.f32 %v637_v54, %v626_v53  ;;  %v639_v0 = vadd.f32 %v637_v54, %v627_v55  ;;  %v640_v2 = vadd.f32 %v637_v54, %v628_v58  ;;  %v641_v47 = vadd.f32 %v637_v54, %v629_v59 }
 0x34e   :  { %v642_v46 = vadd.f32 %v637_v54, %v630_v61  ;;  %v643_v62 = vadd.f32 %v637_v54, %v631_v60  ;;  %v644_v40 = vadd.f32 %v637_v54, %v632_v14  ;;  %v645_v39 = vadd.f32 %v637_v54, %v633_v16 }
 0x34f   :  { %v646_v12 = vpack.c.bf16 %v639_v0, %v638_v63  ;;  %v647_v13 = vpack.c.bf16 %v641_v47, %v640_v2 }
 0x350   :  { %v648_v36 = vpack.c.bf16 %v643_v62, %v642_v46  ;;  %v649_v17 = vpack.c.bf16 %v645_v39, %v644_v40 }
 0x351   :  { %1715 = vmatprep.mubr.bf16.mxu0 %v646_v12 }
 0x352   :  { %1716 = vmatmul.mubr.bf16.vlgmr.msra.gmra.mxu0 %v647_v13 }
 0x353   :  { %1719 = vmatprep.mubr.bf16.mxu0 %v648_v36 }
 0x35a   :  { %1720 = vmatmul.mubr.bf16.gmra.mxu0 %v649_v17 }
 0x35b   :  { %1771 = vmatprep.mubr.msk.bf16.mxu0 %vm490_vm2, %v2143_v50  ;;  %v1861_v50 = vld [vmem:[#allocation2 + $0xb8] sm:$0xff]  }
 0x412   :  { %v1717_v41 = vpop.f32.mrf.mxu0 }
 0x414   :  { %v749_v56 = vpop.f32.mrf.mxu0 }
 0x416   :  { %v1718_v57 = vpop.f32.mrf.mxu0 }
 0x417   :  { %v781_v44 = vpack.c.bf16 %v1718_v57, %v1717_v41 }
 0x418   :  { %v752_v19 = vpop.f32.mrf.mxu0 }
 0x419   :  { %v780_v7 = vpack.c.bf16 %v752_v19, %v749_v56 }
 0x41a   :  { %v1721_v20 = vpop.f32.mrf.mxu0 }
 0x41c   :  { %v765_v21 = vpop.f32.mrf.mxu0 }
 0x41e   :  { %v1722_v22 = vpop.f32.mrf.mxu0 }
 0x41f   :  { %v783_v26 = vpack.c.bf16 %v1722_v22, %v1721_v20 }
 0x420   :  { %v768_v27 = vpop.f32.mrf.mxu0 }
 0x421   :  { %v782_v28 = vpack.c.bf16 %v768_v27, %v765_v21  ;;  %1723 = vmatprep.subr.bf16.mxu1 %v783_v26 }
 0x422   :  { %1724 = vmatpush3.bf16.msra.mxu1 %v783_v26 }
 0x423   :  { %1725 = vmatprep.subr.bf16.mxu1 %v782_v28 }
 0x426   :  { %1726 = vmatpush3.bf16.msra.mxu1 %v782_v28 }
 0x427   :  { %1727 = vmatprep.subr.bf16.mxu1 %v781_v44 }
 0x42a   :  { %1728 = vmatpush3.bf16.msra.mxu1 %v781_v44 }
 0x42b   :  { %1729 = vmatprep.subr.bf16.mxu1 %v780_v7 }
 0x42e   :  { %1730 = vmatpush3.bf16.msra.mxu1 %v780_v7 }
 0x42f   :  { %1739 = vmatprep.subr.bf16.mxu1 %v1861_v50 }
 0x431   :  { %1732 = vmatmul.mubr.msk.bf16.vlgmr.msra.gmra.mxu1 %vm490_vm2, %v2152_v23 }
 0x432   :  { %1735 = vmatprep.mubr.msk.bf16.mxu1 %vm490_vm2, %v2157_v24  ;;  %1740 = vmatpush3.bf16.msra.mxu1 %v1861_v50 }
 0x433   :  { %1741 = vmatprep.subr.bf16.mxu1 %v1862_v29 }
 0x436   :  { %1742 = vmatpush3.bf16.msra.mxu1 %v1862_v29 }
 0x437   :  { %1743 = vmatprep.subr.bf16.mxu1 %v1863_v30 }
 0x439   :  { %1736 = vmatmul.mubr.msk.bf16.gmra.mxu1 %vm490_vm2, %v2166_v25 }
 0x43a   :  { %1744 = vmatpush3.bf16.msra.mxu1 %v1863_v30 }
 0x43b   :  { %1745 = vmatprep.subr.bf16.mxu1 %v1864_v31 }
 0x43e   :  { %1746 = vmatpush3.bf16.msra.mxu1 %v1864_v31 }
 0x43f   :  { %1747 = vmatprep.subr.bf16.mxu1 %v1865_v32 }
 0x442   :  { %1748 = vmatpush3.bf16.msra.mxu1 %v1865_v32 }
 0x443   :  { %1749 = vmatprep.subr.bf16.mxu1 %v1866_v1 }
 0x446   :  { %1750 = vmatpush3.bf16.msra.mxu1 %v1866_v1 }
 0x447   :  { %1751 = vmatprep.subr.bf16.mxu1 %v1867_v33 }
 0x44a   :  { %1752 = vmatpush3.bf16.msra.mxu1 %v1867_v33 }
 0x44b   :  { %1753 = vmatprep.subr.bf16.mxu1 %v1868_v4 }
 0x44e   :  { %1754 = vmatpush3.bf16.msra.mxu1 %v1868_v4 }
 0x4f1   :  { %v1733_v5 = vpop.f32.mrf.mxu1 }
 0x4f2   :  { %v831_v37 = vadd.f32 %v1733_v5, %v787_v8 }
 0x4f3   :  { %v822_v9 = vpop.f32.mrf.mxu1 }
 0x4f4   :  { %v823_v35 = vadd.f32 %v822_v9, %v787_v8  ;;  %v2220_v52 = vmax.f32 %v831_v37, 0.0 }
 0x4f5   :  { %v1734_v10 = vpop.f32.mrf.mxu1 }
 0x4f6   :  { %v834_v38 = vadd.f32 %v1734_v10, %v787_v8  ;;  %v2218_v45 = vmax.f32 %v823_v35, 0.0  ;;  %v877_v2 = vmul.f32 %v2220_v52, %v2220_v52 }
 0x4f7   :  { %v825_v43 = vpop.f32.mrf.mxu1 }
 0x4f8   :  { %v826_v48 = vadd.f32 %v825_v43, %v787_v8  ;;  %v2224_v54 = vmax.f32 %v834_v38, 0.0  ;;  %v875_v58 = vmul.f32 %v2218_v45, %v2218_v45 }
 0x4f9   :  { %v1737_v49 = vpop.f32.mrf.mxu1 }
 0x4fa   :  { %v2222_v53 = vmax.f32 %v826_v48, 0.0  ;;  %v847_v63 = vadd.f32 %v1737_v49, %v787_v8  ;;  %v878_v12 = vmul.f32 %v2224_v54, %v2224_v54 }
 0x4fb   :  { %v838_v55 = vpop.f32.mrf.mxu1 }
 0x4fc   :  { %v861_v59 = vadd.f32 %v2222_v53, %v2218_v45  ;;  %v876_v60 = vmul.f32 %v2222_v53, %v2222_v53  ;;  %v839_v61 = vadd.f32 %v838_v55, %v787_v8  ;;  %v859_v39 = vmax.f32 %v847_v63, 0.0 }
 0x4fd   :  { %v1738_v0 = vpop.f32.mrf.mxu1 }
 0x4fe   :  { %v862_v47 = vadd.f32 %v861_v59, %v2220_v52  ;;  %v883_v46 = vadd.f32 %v876_v60, %v875_v58  ;;  %v857_v62 = vmax.f32 %v839_v61, 0.0  ;;  %v850_v16 = vadd.f32 %v1738_v0, %v787_v8 }
 0x4ff   :  { %v841_v13 = vpop.f32.mrf.mxu1  ;;  %v881_v26 = vmul.f32 %v859_v39, %v859_v39  ;;  %v909_v59 = vsub.s32 6, %v2106_v6 }
 0x500   :  { %v884_v36 = vadd.f32 %v883_v46, %v877_v2  ;;  %v863_v14 = vadd.f32 %v862_v47, %v2224_v54  ;;  %v842_v40 = vadd.f32 %v841_v13, %v787_v8  ;;  %v879_v41 = vmul.f32 %v857_v62, %v857_v62 }
 0x501   :  { %v860_v20 = vmax.f32 %v850_v16, 0.0  ;;  %v921_v2 = vsub.s32 7, %v2106_v6 }
 0x502   :  { %v864_v17 = vadd.f32 %v863_v14, %v857_v62  ;;  %v885_v56 = vadd.f32 %v884_v36, %v878_v12  ;;  %v858_v57 = vmax.f32 %v842_v40, 0.0 }
 0x503   :  { %v882_v44 = vmul.f32 %v860_v20, %v860_v20 }
 0x504   :  { %v886_v19 = vadd.f32 %v885_v56, %v879_v41  ;;  %v865_v21 = vadd.f32 %v864_v17, %v858_v57  ;;  %v880_v22 = vmul.f32 %v858_v57, %v858_v57 }
 0x506   :  { %v866_v27 = vadd.f32 %v865_v21, %v859_v39  ;;  %v887_v28 = vadd.f32 %v886_v19, %v880_v22 }
 0x508   :  { %v867_v7 = vadd.f32 %v866_v27, %v860_v20  ;;  %v888_v50 = vadd.f32 %v887_v28, %v881_v26 }
 0x50a   :  { %v868_v29 = vrot.slane %v867_v7, 4  ;;  %v889_v30 = vadd.f32 %v888_v50, %v882_v44 }
 0x50c   :  { %v869_v31 = vadd.f32 %v868_v29, %v867_v7  ;;  %v890_v32 = vrot.slane %v889_v30, 4 }
 0x50e   :  { %v870_v1 = vrot.slane %v869_v31, 2  ;;  %v891_v33 = vadd.f32 %v890_v32, %v889_v30 }
 0x510   :  { %v871_v4 = vadd.f32 %v870_v1, %v869_v31  ;;  %v892_v5 = vrot.slane %v891_v33, 2 }
 0x512   :  { %v872_v8 = vrot.slane %v871_v4, 1  ;;  %v893_v9 = vadd.f32 %v892_v5, %v891_v33  ;;  %v1969_v33 = vmov 0.0  }
 0x513   :  { %1791 = vmatprep.subr.bf16.mxu1 %v1969_v33 }
 0x514   :  { %v873_v35 = vadd.f32 %v872_v8, %v871_v4  ;;  %v894_v10 = vrot.slane %v893_v9, 1 }
 0x516   :  { %v874_v37 = vmul.f32 0.015625, %v873_v35  ;;  %v895_v38 = vadd.f32 %v894_v10, %v893_v9 }
 0x518   :  { %v896_v43 = vmul.f32 0.015625, %v895_v38  ;;  %v897_v48 = vmul.f32 %v874_v37, %v874_v37 }
 0x51a   :  { %v898_v49 = vsub.f32 %v896_v43, %v897_v48 }
 0x51c   :  { %v899_v55 = vadd.f32 1e-05, %v898_v49 }
 0x51e   :  { %1891 = vrsqrt.f32 %v899_v55 }
 0x52b   :  { %v1892_v58 = vpop.eup %1891 }
 0x52c   :  { %v901_v60 = vmul.f32 %v1892_v58, %v2134_v15 }
 0x52e   :  { %v902_v61 = vmul.f32 %v901_v60, %v874_v37  ;;  %v910_v63 = vrot.slane %v901_v60, %v909_v59 }
 0x530   :  { %v904_v0 = vrot.slane %v902_v61, 7  ;;  %v911_v46 = vmul.f32 %v910_v63, %v2218_v45  ;;  %v912_v13 = vmul.f32 %v910_v63, %v2222_v53  ;;  %v913_v36 = vmul.f32 %v910_v63, %v2220_v52 }
 0x531   :  { %v914_v14 = vmul.f32 %v910_v63, %v2224_v54  ;;  %v916_v16 = vmul.f32 %v910_v63, %v858_v57  ;;  %v915_v40 = vmul.f32 %v910_v63, %v857_v62  ;;  %v917_v45 = vmul.f32 %v910_v63, %v859_v39 }
 0x532   :  { %v906_v47 = vsub.f32 %v2134_v15, %v904_v0  ;;  %v918_v28 = vmul.f32 %v910_v63, %v860_v20 }
 0x534   :  { %v922_v12 = vrot.slane %v906_v47, %v921_v2 }
 0x536   :  { %v923_v17 = vadd.f32 %v922_v12, %v911_v46  ;;  %v924_v41 = vadd.f32 %v922_v12, %v912_v13  ;;  %v925_v56 = vadd.f32 %v922_v12, %v913_v36  ;;  %v926_v19 = vadd.f32 %v922_v12, %v914_v14 }
 0x537   :  { %v927_v21 = vadd.f32 %v922_v12, %v915_v40  ;;  %v928_v22 = vadd.f32 %v922_v12, %v916_v16  ;;  %v929_v53 = vadd.f32 %v922_v12, %v917_v45  ;;  %v930_v52 = vadd.f32 %v922_v12, %v918_v28 }
 0x538   :  { %v931_v26 = vpack.c.bf16 %v924_v41, %v923_v17  ;;  %v932_v27 = vpack.c.bf16 %v926_v19, %v925_v56  ;;  %v1146_v17 = vld [vmem:[%s2313_s2] sm:$0xf]  ;;  %v1869_v41 = vld [vmem:[#allocation5 + $0x70] ss:$8 sps:$4 sm:$0xff]   ;;  %s1971_s2 = smov [#allocation7]  }
 0x539   :  { %v933_v15 = vpack.c.bf16 %v928_v22, %v927_v21  ;;  %v934_v44 = vpack.c.bf16 %v930_v52, %v929_v53  ;;  %v1870_v56 = vld [vmem:[#allocation5 + $0x60] ss:$8 sps:$4 sm:$0xff]   ;;  %v1871_v19 = vld [vmem:[#allocation5 + $0x50] ss:$8 sps:$4 sm:$0xff]   ;;  %s1490_s23 = sshll.u32 %s1971_s2, 4  ;;  %s1491_s23 = int_to_ptr.vmem [resolvable:$true] %s1490_s23 }
 0x53a   :  { %1755 = vmatprep.mubr.bf16.mxu1 %v931_v26  ;;  %v1872_v21 = vld [vmem:[#allocation5 + $0x40] ss:$8 sps:$4 sm:$0xff]   ;;  %v1873_v22 = vld [vmem:[#allocation5 + $0x30] ss:$8 sps:$4 sm:$0xff]   ;;  %s1937_s6 = scalar_lea.vmem %s1491_s23, 128  ;;  %p1942_p11 = scmp.lt.s32.totalorder %s1491_s23, %s1491_s23 }
 0x53b   :  { %1756 = vmatmul.mubr.bf16.vlgmr.msra.gmra.mxu1 %v932_v27  ;;  %v1874_v26 = vld [vmem:[#allocation5 + $0x20] ss:$8 sps:$4 sm:$0xff]   ;;  %v1875_v27 = vld [vmem:[#allocation5 + $0x10] ss:$8 sps:$4 sm:$0xff]   ;;  %p1938_p10 = scmp.ne.s32.totalorder %s1491_s23, %s1937_s6  ;;  %p1943_p12 = scmp.lt.s32.totalorder %s1937_s6, %s1937_s6 }
 0x53c   :  { %1759 = vmatprep.mubr.bf16.mxu1 %v933_v15  ;;  %1792 = vmatpush3.bf16.msra.mxu1 %v1869_v41  ;;  %v1876_v15 = vld [vmem:[#allocation5] ss:$8 sps:$4 sm:$0xff]  }
 0x53d   :  { %1793 = vmatprep.subr.bf16.mxu1 %v1969_v33  ;;  %p1944_p13 = por %p1943_p12, %p1942_p11 }
 0x53f   :  { %p1945_p0 = pnand %p1944_p13, %p1938_p10 }
 0x540   :  { %1794 = vmatpush3.bf16.msra.mxu1 %v1870_v56 }
 0x541   :  { %1795 = vmatprep.subr.bf16.mxu1 %v1969_v33 }
 0x543   :  { %1760 = vmatmul.mubr.bf16.gmra.mxu1 %v934_v44 }
 0x544   :  { %1807 = vmatprep.mubr.msk.bf16.mxu1 %vm1970_vm3, %v1969_v33  ;;  %1796 = vmatpush3.bf16.msra.mxu1 %v1871_v19 }
 0x545   :  { %1797 = vmatprep.subr.bf16.mxu1 %v1969_v33 }
 0x548   :  { %1798 = vmatpush3.bf16.msra.mxu1 %v1872_v21 }
 0x549   :  { %1799 = vmatprep.subr.bf16.mxu1 %v1969_v33 }
 0x54c   :  { %1800 = vmatpush3.bf16.msra.mxu1 %v1873_v22 }
 0x54d   :  { %1801 = vmatprep.subr.bf16.mxu1 %v1969_v33 }
 0x550   :  { %1802 = vmatpush3.bf16.msra.mxu1 %v1874_v26 }
 0x551   :  { %1803 = vmatprep.subr.bf16.mxu1 %v1969_v33 }
 0x554   :  { %1804 = vmatpush3.bf16.msra.mxu1 %v1875_v27 }
 0x555   :  { %1805 = vmatprep.subr.bf16.mxu1 %v1969_v33 }
 0x558   :  { %1806 = vmatpush3.bf16.msra.mxu1 %v1876_v15 }
 0x5fb   :  { %v1757_v54 = vpop.f32.mrf.mxu1 }
 0x5fd   :  { %v1034_v62 = vpop.f32.mrf.mxu1 }
 0x5ff   :  { %v1758_v57 = vpop.f32.mrf.mxu1 }
 0x600   :  { %v1066_v39 = vpack.c.bf16 %v1758_v57, %v1757_v54 }
 0x601   :  { %v1037_v7 = vpop.f32.mrf.mxu1 }
 0x602   :  { %v1065_v20 = vpack.c.bf16 %v1037_v7, %v1034_v62 }
 0x603   :  { %v1761_v50 = vpop.f32.mrf.mxu1 }
 0x605   :  { %v1050_v29 = vpop.f32.mrf.mxu1 }
 0x607   :  { %v1762_v30 = vpop.f32.mrf.mxu1 }
 0x608   :  { %v1068_v31 = vpack.c.bf16 %v1762_v30, %v1761_v50 }
 0x609   :  { %v1053_v32 = vpop.f32.mrf.mxu1 }
 0x60a   :  { %v1067_v1 = vpack.c.bf16 %v1053_v32, %v1050_v29  ;;  %1763 = vmatprep.subr.bf16.mxu0 %v1068_v31 }
 0x60b   :  { %1764 = vmatpush3.bf16.msra.mxu0 %v1068_v31 }
 0x60c   :  { %1765 = vmatprep.subr.bf16.mxu0 %v1067_v1 }
 0x60f   :  { %1766 = vmatpush3.bf16.msra.mxu0 %v1067_v1 }
 0x610   :  { %1767 = vmatprep.subr.bf16.mxu0 %v1066_v39 }
 0x613   :  { %1768 = vmatpush3.bf16.msra.mxu0 %v1066_v39 }
 0x614   :  { %1769 = vmatprep.subr.bf16.mxu0 %v1065_v20 }
 0x617   :  { %1770 = vmatpush3.bf16.msra.mxu0 %v1065_v20 }
 0x618   :  { %1779 = vmatprep.subr.bf16.mxu0 %v1969_v33 }
 0x61a   :  { %1772 = vmatmul.mubr.msk.bf16.vlgmr.msra.gmra.mxu0 %vm490_vm2, %v2152_v23 }
 0x61b   :  { %1775 = vmatprep.mubr.msk.bf16.mxu0 %vm490_vm2, %v2157_v24  ;;  %v2263_v24 = vld [vmem:[%s2318_s7 + $0x8] sm:$0xff] }
 0x61c   :  { %v1072_v9 = vrot.slane %v2263_v24, %v2112_v11 }
 0x622   :  { %1776 = vmatmul.mubr.msk.bf16.gmra.mxu0 %vm490_vm2, %v2166_v25 }
 0x623   :  { %1787 = vmatprep.mubr.msk.bf16.mxu0 %vm1970_vm3, %v1969_v33 }
 0x6da   :  { %v1773_v4 = vpop.f32.mrf.mxu0 }
 0x6db   :  { %v1116_v0 = vadd.f32 %v1773_v4, %v1072_v9 }
 0x6dc   :  { %v1107_v23 = vpop.f32.mrf.mxu0 }
 0x6dd   :  { %v1140_v12 = vmax.f32 %v1116_v0, 0.0  ;;  %v1108_v13 = vadd.f32 %v1107_v23, %v1072_v9  ;;  %v1882_v0 = vld [vmem:[#allocation5 + $0x24] ss:$8 sps:$4 sm:$0xff]  }
 0x6de   :  { %v1774_v5 = vpop.f32.mrf.mxu0 }
 0x6df   :  { %v1119_v60 = vadd.f32 %v1774_v5, %v1072_v9  ;;  %v1138_v16 = vmax.f32 %v1108_v13, 0.0 }
 0x6e0   :  { %v1110_v25 = vpop.f32.mrf.mxu0 }
 0x6e1   :  { %v1141_v47 = vmax.f32 %v1119_v60, 0.0  ;;  %v1111_v46 = vadd.f32 %v1110_v25, %v1072_v9  ;;  %v1877_v60 = vld [vmem:[#allocation5 + $0x74] ss:$8 sps:$4 sm:$0xff]  }
 0x6e2   :  { %v1777_v8 = vpop.f32.mrf.mxu0 }
 0x6e3   :  { %v1132_v10 = vadd.f32 %v1777_v8, %v1072_v9  ;;  %v1148_v36 = vpack.c.bf16 %v1141_v47, %v1140_v12  ;;  %v1139_v14 = vmax.f32 %v1111_v46, 0.0  ;;  %v1884_v47 = vld [vmem:[#allocation5 + $0x4] ss:$8 sps:$4 sm:$0xff]   ;;  %v1249_v46 = vrot.slane %v2263_v24, %v624_v42 }
 0x6e4   :  { %v1123_v35 = vpop.f32.mrf.mxu0 }
 0x6e5   :  { %v1144_v48 = vmax.f32 %v1132_v10, 0.0  ;;  %v1124_v49 = vadd.f32 %v1123_v35, %v1072_v9  ;;  %v1147_v40 = vpack.c.bf16 %v1139_v14, %v1138_v16 }
 0x6e6   :  { %v1778_v37 = vpop.f32.mrf.mxu0 }
 0x6e7   :  { %v1135_v38 = vadd.f32 %v1778_v37, %v1072_v9  ;;  %v1142_v2 = vmax.f32 %v1124_v49, 0.0 }
 0x6e8   :  { %v1126_v43 = vpop.f32.mrf.mxu0 }
 0x6e9   :  { %v1145_v55 = vmax.f32 %v1135_v38, 0.0  ;;  %v1127_v58 = vadd.f32 %v1126_v43, %v1072_v9 }
 0x6eb   :  { %v1150_v61 = vpack.c.bf16 %v1145_v55, %v1144_v48  ;;  %v1143_v63 = vmax.f32 %v1127_v58, 0.0 }
 0x6ed   :  { %1780 = vmatpush3.bf16.msra.mxu0 %v1150_v61  ;;  %v1149_v11 = vpack.c.bf16 %v1143_v63, %v1142_v2  ;;  %v1878_v61 = vld [vmem:[#allocation5 + $0x64] ss:$8 sps:$4 sm:$0xff]   ;;  %v1879_v63 = vld [vmem:[#allocation5 + $0x54] ss:$8 sps:$4 sm:$0xff]  }
 0x6ee   :  { %1781 = vmatprep.subr.bf16.mxu0 %v1969_v33  ;;  %v1883_v2 = vld [vmem:[#allocation5 + $0x14] ss:$8 sps:$4 sm:$0xff]  }
 0x6f1   :  { %1782 = vmatpush3.bf16.msra.mxu0 %v1149_v11 }
 0x6f2   :  { %1783 = vmatprep.subr.bf16.mxu0 %v1969_v33 }
 0x6f5   :  { %1784 = vmatpush3.bf16.msra.mxu0 %v1148_v36 }
 0x6f6   :  { %1785 = vmatprep.subr.bf16.mxu0 %v1969_v33 }
 0x6f9   :  { %1786 = vmatpush3.bf16.msra.mxu0 %v1147_v40 }
 0x6fa   :  { %1811 = vmatprep.subr.bf16.mxu0 %v1969_v33 }
 0x6fc   :  { %1788 = vmatmul.mubr.msk.bf16.vlgmr.msra.gmra.mxu0 %vm490_vm2, %v1146_v17 }
 0x6fd   :  { %1827 = vmatprep.mubr.msk.bf16.mxu0 %vm1970_vm3, %v1969_v33  ;;  %1812 = vmatpush3.bf16.msra.mxu0 %v1877_v60 }
 0x6fe   :  { %1813 = vmatprep.subr.bf16.mxu0 %v1969_v33 }
 0x701   :  { %1814 = vmatpush3.bf16.msra.mxu0 %v1878_v61 }
 0x702   :  { %1815 = vmatprep.subr.bf16.mxu0 %v1969_v33 }
 0x705   :  { %1816 = vmatpush3.bf16.msra.mxu0 %v1879_v63 }
 0x706   :  { %1817 = vmatprep.subr.bf16.mxu0 %v1969_v33 }
 0x7bc   :  { %v1188_v45 = vpop.f32.mrf.mxu0 }
 0x7bd   :  { %v1194_v28 = vrot.slane %v1188_v45, 4  ;;  %v1201_v53 = vmul.f32 %v1188_v45, %v1188_v45 }
 0x7be   :  { %v1789_v52 = vpop.f32.mrf.mxu0 }
 0x7bf   :  { %v1195_v44 = vadd.f32 %v1194_v28, %v1188_v45  ;;  %v1202_v54 = vrot.slane %v1201_v53, 4 }
 0x7c0   :  { %v1191_v62 = vpop.f32.mrf.mxu0 }
 0x7c1   :  { %v1196_v57 = vrot.slane %v1195_v44, 2  ;;  %v1203_v7 = vadd.f32 %v1202_v54, %v1201_v53 }
 0x7c2   :  { %v1790_v50 = vpop.f32.mrf.mxu0 }
 0x7c3   :  { %v1197_v29 = vadd.f32 %v1196_v57, %v1195_v44  ;;  %v1204_v30 = vrot.slane %v1203_v7, 2 }
 0x7c5   :  { %v1198_v31 = vrot.slane %v1197_v29, 1  ;;  %v1205_v32 = vadd.f32 %v1204_v30, %v1203_v7 }
 0x7c7   :  { %v1199_v1 = vadd.f32 %v1198_v31, %v1197_v29  ;;  %v1206_v39 = vrot.slane %v1205_v32, 1 }
 0x7c9   :  { %v1200_v20 = vmul.f32 0.125, %v1199_v1  ;;  %v1207_v4 = vadd.f32 %v1206_v39, %v1205_v32 }
 0x7cb   :  { %v1208_v23 = vmul.f32 0.125, %v1207_v4  ;;  %v1209_v5 = vmul.f32 %v1200_v20, %v1200_v20 }
 0x7cd   :  { %v1210_v25 = vsub.f32 %v1208_v23, %v1209_v5 }
 0x7cf   :  { %v1211_v8 = vadd.f32 1e-05, %v1210_v25 }
 0x7d1   :  { %1893 = vrsqrt.f32 %v1211_v8 }
 0x7de   :  { %v1894_v9 = vpop.eup %1893 }
 0x7df   :  { %v1213_v35 = vmul.f32 %v1894_v9, %v2263_v24 }
 0x7e1   :  { %v1214_v10 = vmul.f32 %v1213_v35, %v1200_v20  ;;  %v1222_v38 = vrot.slane %v1213_v35, %v2116_v18  ;;  %v1880_v18 = vld [vmem:[#allocation5 + $0x44] ss:$8 sps:$4 sm:$0xff]   ;;  %v1394_v20 = vrot.slane %v2263_v24, %v909_v59 }
 0x7e2   :  { %1818 = vmatpush3.bf16.msra.mxu0 %v1880_v18 }
 0x7e3   :  { %v1216_v37 = vrot.slane %v1214_v10, 7  ;;  %v1223_v48 = vmul.f32 %v1222_v38, %v1188_v45  ;;  %1819 = vmatprep.subr.bf16.mxu0 %v1969_v33 }
 0x7e5   :  { %v1218_v43 = vsub.f32 %v2263_v24, %v1216_v37 }
 0x7e7   :  { %v1227_v49 = vrot.slane %v1218_v43, %v468_v3  ;;  %v1881_v3 = vld [vmem:[#allocation5 + $0x34] ss:$8 sps:$4 sm:$0xff]  }
 0x7e8   :  { %1820 = vmatpush3.bf16.msra.mxu0 %v1881_v3 }
 0x7e9   :  { %v1228_v55 = vadd.f32 %v1227_v49, %v1223_v48  ;;  %1821 = vmatprep.subr.bf16.mxu0 %v1969_v33 }
 0x7eb   :  { %v1229_v58 = vpack.c.bf16 %v1228_v55, %v1228_v55 }
 0x7ec   :  { %1822 = vmatpush3.bf16.msra.mxu0 %v1882_v0 }
 0x7ed   :  { %1808 = vmatmul.mubr.bf16.vlgmr.msra.gmra.mxu1 %v1229_v58  ;;  %1823 = vmatprep.subr.bf16.mxu0 %v1969_v33 }
 0x7f0   :  { %1824 = vmatpush3.bf16.msra.mxu0 %v1883_v2 }
 0x7f1   :  { %1825 = vmatprep.subr.bf16.mxu0 %v1969_v33 }
 0x7f4   :  { %1826 = vmatpush3.bf16.msra.mxu0 %v1884_v47 }
 0x8ad   :  { %v1332_v11 = vpop.f32.mrf.mxu1 }
 0x8ae   :  { %v1333_v12 = vadd.f32 %v1332_v11, %v1249_v46 }
 0x8af   :  { %v1809_v13 = vpop.f32.mrf.mxu1 }
 0x8b0   :  { %v1338_v36 = vmax.f32 %v1333_v12, 0.0 }
 0x8b1   :  { %v1335_v14 = vpop.f32.mrf.mxu1 }
 0x8b2   :  { %v1339_v16 = vrot.slane %v1338_v36, 4  ;;  %v1346_v40 = vmul.f32 %v1338_v36, %v1338_v36 }
 0x8b3   :  { %v1810_v17 = vpop.f32.mrf.mxu1 }
 0x8b4   :  { %v1340_v41 = vadd.f32 %v1339_v16, %v1338_v36  ;;  %v1347_v56 = vrot.slane %v1346_v40, 4 }
 0x8b6   :  { %v1341_v19 = vrot.slane %v1340_v41, 2  ;;  %v1348_v21 = vadd.f32 %v1347_v56, %v1346_v40 }
 0x8b8   :  { %v1342_v22 = vadd.f32 %v1341_v19, %v1340_v41  ;;  %v1349_v26 = vrot.slane %v1348_v21, 2 }
 0x8ba   :  { %v1343_v33 = vrot.slane %v1342_v22, 1  ;;  %v1350_v27 = vadd.f32 %v1349_v26, %v1348_v21 }
 0x8bc   :  { %v1344_v15 = vadd.f32 %v1343_v33, %v1342_v22  ;;  %v1351_v45 = vrot.slane %v1350_v27, 1 }
 0x8be   :  { %v1345_v28 = vmul.f32 0.125, %v1344_v15  ;;  %v1352_v42 = vadd.f32 %v1351_v45, %v1350_v27 }
 0x8c0   :  { %v1353_v53 = vmul.f32 0.125, %v1352_v42  ;;  %v1354_v52 = vmul.f32 %v1345_v28, %v1345_v28 }
 0x8c2   :  { %v1355_v44 = vsub.f32 %v1353_v53, %v1354_v52 }
 0x8c4   :  { %v1356_v54 = vadd.f32 1e-05, %v1355_v44 }
 0x8c6   :  { %1895 = vrsqrt.f32 %v1356_v54 }
 0x8d3   :  { %v1896_v62 = vpop.eup %1895 }
 0x8d4   :  { %v1358_v57 = vmul.f32 %v1896_v62, %v2263_v24 }
 0x8d6   :  { %v1359_v7 = vmul.f32 %v1358_v57, %v1345_v28  ;;  %v1367_v50 = vrot.slane %v1358_v57, %v636_v51 }
 0x8d8   :  { %v1361_v29 = vrot.slane %v1359_v7, 7  ;;  %v1368_v31 = vmul.f32 %v1367_v50, %v1338_v36 }
 0x8da   :  { %v1363_v30 = vsub.f32 %v2263_v24, %v1361_v29 }
 0x8dc   :  { %v1372_v32 = vrot.slane %v1363_v30, %v786_v34 }
 0x8de   :  { %v1373_v1 = vadd.f32 %v1372_v32, %v1368_v31 }
 0x8e0   :  { %v1374_v39 = vpack.c.bf16 %v1373_v1, %v1373_v1 }
 0x8e2   :  { %1828 = vmatmul.mubr.bf16.vlgmr.msra.gmra.mxu0 %v1374_v39 }
 0x9a2   :  { %v1477_v4 = vpop.f32.mrf.mxu0 }
 0x9a3   :  { %v1478_v23 = vadd.f32 %v1477_v4, %v1394_v20 }
 0x9a4   :  { %v1829_v51 = vpop.f32.mrf.mxu0 }
 0x9a5   :  { %1483 = vst [vmem:[#allocation7] sm:$0xff] %v1478_v23 }
 0x9a6   :  { %v1480_v5 = vpop.f32.mrf.mxu0 }
 0x9a7   :  { %1948 = shalt.err (!%p1945_p0)
}
 0x9a8   :  { %1493 = dma.vmem_to_hbm [thread:$0]  %s1491_s23, 128, %s2319_s8, [#allocation4]   ;;  %v1830_v6 = vpop.f32.mrf.mxu0 }
 0x9a9   :  { %1961 = dma.done.wait [#allocation4], 128  }
 0x9aa   :  { %1962 = vsyncadd [#allocation4], 4294967168 }
 0x9ab   :  { %1497 = vsyncpa [#allocation3], 1 }
 0x9ac   :  { %1498 = vsyncpa [#allocation6], 1 }
 0x9ad   :  { %1499 = vsyncpa [#allocation4], 1 }

</bundles_post_ra>
